<compile_context>
chip_gen: v6e
topology: v6e:2x2x1
jax: 0.10.0
libtpu: 0.0.40
codegen_flags: <defaults>
</compile_context>

<pallas_src>
import functools
import math

import jax
import jax.numpy as jnp
from jax.experimental import pallas as pl
from jax.experimental.pallas import tpu as pltpu


def _encoder_stack_kernel(x_ref, pos_ref, bias_ref,
                          wqkv_ref, bqkv_ref, wo_ref, bo_ref,
                          w1_ref, b1_ref, w2_ref, b2_ref,
                          g1_ref, be1_ref, g2_ref, be2_ref,
                          out_ref, *, batch, seq, nhead, num_layers, eps,
                          compute_dtype):
    D = out_ref.shape[-1]
    HD = D // nhead
    BS = batch * seq
    cd = compute_dtype

    # Fused positional-encoding add, then fold batch into the matmul row axis
    # (leading-dim merge only; no lane relayout).
    x = (x_ref[...].astype(jnp.float32) + pos_ref[...][None]).reshape(BS, D)

    # Block-diagonal additive mask (0 within a batch element, -1e30 across
    # elements) so folding batch into rows never mixes samples in attention.
    attn_bias = bias_ref[...]                                        # (BS, BS)

    for l in range(num_layers):                      # static unrolled layer loop
        # ---------------- multi-head self-attention ----------------
        # 1/sqrt(HD) already folded into the Q columns of wqkv/bqkv on host.
        qkv = jnp.dot(x.astype(cd), wqkv_ref[l].astype(cd),
                      preferred_element_type=jnp.float32) + bqkv_ref[l]  # (BS, 3D)

        # Head-major stacks (nhead, BS, HD): one lane slice per head, then all
        # heads go through a single pair of batched contractions.
        q_n = jnp.stack([qkv[:, h * HD:(h + 1) * HD]
                         for h in range(nhead)], axis=0)
        k_n = jnp.stack([qkv[:, D + h * HD:D + (h + 1) * HD]
                         for h in range(nhead)], axis=0)
        v_n = jnp.stack([qkv[:, 2 * D + h * HD:2 * D + (h + 1) * HD]
                         for h in range(nhead)], axis=0)

        s = jnp.einsum('nqh,nkh->nqk', q_n.astype(cd), k_n.astype(cd),
                       preferred_element_type=jnp.float32)           # (H, BS, BS)
        s = s + attn_bias
        s = s - jnp.max(s, axis=-1, keepdims=True)
        p = jnp.exp(s)
        p = p * pl.reciprocal(jnp.sum(p, axis=-1, keepdims=True), approx=True)
        ctx = jnp.einsum('nqk,nkh->nqh', p.astype(cd), v_n.astype(cd),
                         preferred_element_type=jnp.float32)         # (H, BS, HD)

        # Output projection: head recombination folded into per-head row blocks
        # of W_o (leading-index weight slices + accumulate; no lane concat).
        wo_l = wo_ref[l]                                             # (H, HD, D)
        attn = jnp.zeros((BS, D), jnp.float32)
        for h in range(nhead):
            attn = attn + jnp.dot(ctx[h].astype(cd), wo_l[h].astype(cd),
                                  preferred_element_type=jnp.float32)
        attn = attn + bo_ref[l]

        # residual + LayerNorm1 (post-norm; dropout = identity in eval mode)
        h1 = x + attn
        mu1 = jnp.mean(h1, axis=-1, keepdims=True)
        var1 = jnp.mean((h1 - mu1) ** 2, axis=-1, keepdims=True)
        h1 = (h1 - mu1) * jax.lax.rsqrt(var1 + eps) * g1_ref[l] + be1_ref[l]

        # ---------------- feed-forward (ReLU) ----------------
        ff = jnp.dot(h1.astype(cd), w1_ref[l].astype(cd),
                     preferred_element_type=jnp.float32) + b1_ref[l]
        ff = jnp.maximum(ff, 0.0)
        ff = jnp.dot(ff.astype(cd), w2_ref[l].astype(cd),
                     preferred_element_type=jnp.float32) + b2_ref[l]

        # residual + LayerNorm2
        h2 = h1 + ff
        mu2 = jnp.mean(h2, axis=-1, keepdims=True)
        var2 = jnp.mean((h2 - mu2) ** 2, axis=-1, keepdims=True)
        x = (h2 - mu2) * jax.lax.rsqrt(var2 + eps) * g2_ref[l] + be2_ref[l]

    out_ref[...] = x.reshape(batch, seq, D).astype(out_ref.dtype)


_PARAM_ORDER = ("wqkv", "bqkv", "wo", "bo", "w1", "b1", "w2", "b2",
                "g1", "be1", "g2", "be2")


def temporal_transformer_encoder(x, pos_encoding, packed_params, nhead,
                                 *, compute_dtype=jnp.float32):
    """Forward pass of TemporalTransformerEncoder (eval mode) as one pallas_call.

    x:            [batch, seq_len, d_model]   (batch_first=True)
    pos_encoding: [1, 100, d_model]           learned positional encoding
    """
    B, S, D = x.shape
    assert S <= pos_encoding.shape[1], "seq_len exceeds positional-encoding length"
    num_layers = packed_params["wqkv"].shape[0]

    pos = pos_encoding[0, :S, :]                      # (S, D), host-side slice

    # Host-precomputed block-diagonal attention bias for the folded-batch rows.
    row = jnp.arange(B * S, dtype=jnp.int32) // S
    attn_bias = jnp.where(row[:, None] == row[None, :], 0.0, -1e30
                          ).astype(jnp.float32)       # (B*S, B*S)

    kernel = functools.partial(
        _encoder_stack_kernel, batch=B, seq=S, nhead=nhead,
        num_layers=num_layers, eps=1e-5, compute_dtype=compute_dtype)

    # No grid: at these sizes the whole batch, the positional slice, the mask
    # and the layer-stacked weights all fit in VMEM as single whole-array
    # blocks, so the full encoder stack runs in one kernel invocation.
    # TODO(synk): for large batch on v7x, reintroduce a size>=2 "parallel"
    # batch grid axis so both TensorCores are used.
    return pl.pallas_call(
        kernel,
        out_shape=jax.ShapeDtypeStruct((B, S, D), x.dtype),
        compiler_params=pltpu.CompilerParams(
            vmem_limit_bytes=32 * 1024 * 1024),       # headroom for larger configs
    )(x, pos, attn_bias, *[packed_params[name] for name in _PARAM_ORDER])


# ----------------------------------------------------------------------------
# Parameters: synthetic init in PyTorch layout + one-time host-side repack.
# ----------------------------------------------------------------------------
def init_torch_params(key, d_model, nhead, dim_feedforward, num_layers):
    """Per-layer parameters in nn.TransformerEncoderLayer layout (synthetic init)."""
    layers = []
    for _ in range(num_layers):
        key, k0, k1, k2, k3, k4, k5, k6, k7 = jax.random.split(key, 9)
        layers.append(dict(
            in_proj_weight=0.02 * jax.random.normal(k0, (3 * d_model, d_model), jnp.float32),
            in_proj_bias=0.02 * jax.random.normal(k1, (3 * d_model,), jnp.float32),
            out_proj_weight=0.02 * jax.random.normal(k2, (d_model, d_model), jnp.float32),
            out_proj_bias=0.02 * jax.random.normal(k3, (d_model,), jnp.float32),
            linear1_weight=0.02 * jax.random.normal(k4, (dim_feedforward, d_model), jnp.float32),
            linear1_bias=0.02 * jax.random.normal(k5, (dim_feedforward,), jnp.float32),
            linear2_weight=0.02 * jax.random.normal(k6, (d_model, dim_feedforward), jnp.float32),
            linear2_bias=0.02 * jax.random.normal(k7, (d_model,), jnp.float32),
            norm1_weight=jnp.ones((d_model,), jnp.float32),
            norm1_bias=jnp.zeros((d_model,), jnp.float32),
            norm2_weight=jnp.ones((d_model,), jnp.float32),
            norm2_bias=jnp.zeros((d_model,), jnp.float32),
        ))
    return layers


def pack_params(torch_layers, nhead):
    """Host-side repack: pre-transpose weights (no '.T' in kernel), fold the
    1/sqrt(head_dim) attention scale into W_q/b_q, split W_o per head, and
    stack a leading layer axis so the whole stack is one pallas_call."""
    d_model = torch_layers[0]["out_proj_weight"].shape[0]
    hd = d_model // nhead
    scale = 1.0 / math.sqrt(hd)

    def stack(fn):
        return jnp.stack([fn(lp) for lp in torch_layers], axis=0)

    def qkv_w(p):
        w = p["in_proj_weight"].T                                     # (D, 3D)
        return w.at[:, :d_model].multiply(scale)                      # scale Q cols

    def qkv_b(p):
        b = p["in_proj_bias"]
        return b.at[:d_model].multiply(scale)[None, :]                # (1, 3D)

    return dict(
        wqkv=stack(qkv_w),                                                        # (L, D, 3D)
        bqkv=stack(qkv_b),                                                        # (L, 1, 3D)
        wo=stack(lambda p: p["out_proj_weight"].T.reshape(nhead, hd, d_model)),   # (L, H, HD, D)
        bo=stack(lambda p: p["out_proj_bias"][None, :]),                          # (L, 1, D)
        w1=stack(lambda p: p["linear1_weight"].T),                                # (L, D, FF)
        b1=stack(lambda p: p["linear1_bias"][None, :]),                           # (L, 1, FF)
        w2=stack(lambda p: p["linear2_weight"].T),                                # (L, FF, D)
        b2=stack(lambda p: p["linear2_bias"][None, :]),                           # (L, 1, D)
        g1=stack(lambda p: p["norm1_weight"][None, :]),                           # (L, 1, D)
        be1=stack(lambda p: p["norm1_bias"][None, :]),
        g2=stack(lambda p: p["norm2_weight"][None, :]),
        be2=stack(lambda p: p["norm2_bias"][None, :]),
    )


# ----------------------------------------------------------------------------
# Pure-JAX reference (eval-mode PyTorch semantics) for a correctness check.
# ----------------------------------------------------------------------------
def _layer_norm(x, g, b, eps=1e-5):
    mu = jnp.mean(x, axis=-1, keepdims=True)
    var = jnp.mean((x - mu) ** 2, axis=-1, keepdims=True)
    return (x - mu) * jax.lax.rsqrt(var + eps) * g + b


def reference_forward(x, pos_encoding, torch_layers, nhead, eps=1e-5):
    B, S, D = x.shape
    HD = D // nhead
    h = x + pos_encoding[:, :S, :]
    for p in torch_layers:
        qkv = h @ p["in_proj_weight"].T + p["in_proj_bias"]
        q, k, v = jnp.split(qkv, 3, axis=-1)

        def to_heads(t):
            return t.reshape(B, S, nhead, HD).transpose(0, 2, 1, 3)

        qh, kh, vh = to_heads(q), to_heads(k), to_heads(v)
        s = jnp.einsum("bnqh,bnkh->bnqk", qh, kh) / math.sqrt(HD)
        a = jax.nn.softmax(s, axis=-1)
        ctx = jnp.einsum("bnqk,bnkh->bnqh", a, vh)
        ctx = ctx.transpose(0, 2, 1, 3).reshape(B, S, D)
        attn = ctx @ p["out_proj_weight"].T + p["out_proj_bias"]
        h1 = _layer_norm(h + attn, p["norm1_weight"], p["norm1_bias"], eps)
        ff = jnp.maximum(h1 @ p["linear1_weight"].T + p["linear1_bias"], 0.0)
        ff = ff @ p["linear2_weight"].T + p["linear2_bias"]
        h = _layer_norm(h1 + ff, p["norm2_weight"], p["norm2_bias"], eps)
    return h


if __name__ == "__main__":
    # small shapes consistent with forward(x: [batch, seq, features])
    B, S, D_MODEL, NHEAD, DIM_FF, NUM_LAYERS = 2, 8, 32, 4, 64, 2

    key = jax.random.PRNGKey(0)
    k_x, k_pe, k_p = jax.random.split(key, 3)

    x = jax.random.normal(k_x, (B, S, D_MODEL), jnp.float32)
    positional_encoding = 0.02 * jax.random.normal(
        k_pe, (1, 100, D_MODEL), jnp.float32)

    torch_layers = init_torch_params(k_p, D_MODEL, NHEAD, DIM_FF, NUM_LAYERS)
    packed = pack_params(torch_layers, NHEAD)

    out = temporal_transformer_encoder(x, positional_encoding, packed, NHEAD)
    out = jax.block_until_ready(out)
    assert out.shape == (B, S, D_MODEL)

    ref = jax.block_until_ready(
        reference_forward(x, positional_encoding, torch_layers, NHEAD))
    max_err = float(jnp.max(jnp.abs(out - ref)))
    assert max_err < 5e-2, f"kernel/reference mismatch: max abs err = {max_err}"

    print("KERNEL_OK")
</pallas_src>

<mosaic_0001>
module attributes {stable_mosaic.version = 11 : i64} {
  func.func @_encoder_stack_kernel(%arg0: memref<2x8x32xf32, #tpu.memory_space<vmem>>, %arg1: memref<8x32xf32, #tpu.memory_space<vmem>>, %arg2: memref<16x16xf32, #tpu.memory_space<vmem>>, %arg3: memref<2x32x96xf32, #tpu.memory_space<vmem>>, %arg4: memref<2x1x96xf32, #tpu.memory_space<vmem>>, %arg5: memref<2x4x8x32xf32, #tpu.memory_space<vmem>>, %arg6: memref<2x1x32xf32, #tpu.memory_space<vmem>>, %arg7: memref<2x32x64xf32, #tpu.memory_space<vmem>>, %arg8: memref<2x1x64xf32, #tpu.memory_space<vmem>>, %arg9: memref<2x64x32xf32, #tpu.memory_space<vmem>>, %arg10: memref<2x1x32xf32, #tpu.memory_space<vmem>>, %arg11: memref<2x1x32xf32, #tpu.memory_space<vmem>>, %arg12: memref<2x1x32xf32, #tpu.memory_space<vmem>>, %arg13: memref<2x1x32xf32, #tpu.memory_space<vmem>>, %arg14: memref<2x1x32xf32, #tpu.memory_space<vmem>>, %arg15: memref<2x8x32xf32, #tpu.memory_space<vmem>>) attributes {dimension_semantics = [], scalar_prefetch = 0 : i64, scratch_operands = 0 : i64, tpu.core_type = #tpu.core_type<tc>} {
    %c0 = arith.constant 0 : index
    %c0_0 = arith.constant 0 : index
    %c0_1 = arith.constant 0 : index
    %0 = vector.load %arg0[%c0, %c0_0, %c0_1] : memref<2x8x32xf32, #tpu.memory_space<vmem>>, vector<2x8x32xf32>
    %c0_2 = arith.constant 0 : index
    %c0_3 = arith.constant 0 : index
    %1 = vector.load %arg1[%c0_2, %c0_3] : memref<8x32xf32, #tpu.memory_space<vmem>>, vector<8x32xf32>
    %2 = vector.shape_cast %1 : vector<8x32xf32> to vector<1x8x32xf32>
    %3 = vector.broadcast %2 : vector<1x8x32xf32> to vector<2x8x32xf32>
    %4 = arith.addf %0, %3 : vector<2x8x32xf32>
    %5 = vector.shape_cast %4 : vector<2x8x32xf32> to vector<16x32xf32>
    %c0_4 = arith.constant 0 : index
    %c0_5 = arith.constant 0 : index
    %6 = vector.load %arg2[%c0_4, %c0_5] : memref<16x16xf32, #tpu.memory_space<vmem>>, vector<16x16xf32>
    %c0_6 = arith.constant 0 : index
    %c0_7 = arith.constant 0 : index
    %c0_8 = arith.constant 0 : index
    %7 = vector.load %arg3[%c0_6, %c0_7, %c0_8] : memref<2x32x96xf32, #tpu.memory_space<vmem>>, vector<1x32x96xf32>
    %8 = vector.shape_cast %7 : vector<1x32x96xf32> to vector<32x96xf32>
    %cst = arith.constant dense<0.000000e+00> : vector<16x96xf32>
    %9 = tpu.matmul %5, %8, %cst {dimension_numbers = #tpu.dot_dimension_numbers<[1], [0], [0], [1], [0, 0, 1, 1], [], []>} : vector<16x32xf32>, vector<32x96xf32>, vector<16x96xf32> -> vector<16x96xf32>
    %c0_9 = arith.constant 0 : index
    %c0_10 = arith.constant 0 : index
    %c0_11 = arith.constant 0 : index
    %10 = vector.load %arg4[%c0_9, %c0_10, %c0_11] : memref<2x1x96xf32, #tpu.memory_space<vmem>>, vector<1x1x96xf32>
    %11 = vector.shape_cast %10 : vector<1x1x96xf32> to vector<1x96xf32>
    %12 = vector.broadcast %11 : vector<1x96xf32> to vector<16x96xf32>
    %13 = arith.addf %9, %12 : vector<16x96xf32>
    %14 = vector.extract_strided_slice %13 {offsets = [0, 0], sizes = [16, 8], strides = [1, 1]} : vector<16x96xf32> to vector<16x8xf32>
    %15 = vector.extract_strided_slice %13 {offsets = [0, 8], sizes = [16, 8], strides = [1, 1]} : vector<16x96xf32> to vector<16x8xf32>
    %16 = vector.extract_strided_slice %13 {offsets = [0, 16], sizes = [16, 8], strides = [1, 1]} : vector<16x96xf32> to vector<16x8xf32>
    %17 = vector.extract_strided_slice %13 {offsets = [0, 24], sizes = [16, 8], strides = [1, 1]} : vector<16x96xf32> to vector<16x8xf32>
    %18 = vector.shape_cast %14 : vector<16x8xf32> to vector<1x16x8xf32>
    %19 = vector.shape_cast %15 : vector<16x8xf32> to vector<1x16x8xf32>
    %20 = vector.shape_cast %16 : vector<16x8xf32> to vector<1x16x8xf32>
    %21 = vector.shape_cast %17 : vector<16x8xf32> to vector<1x16x8xf32>
    %22 = tpu.concatenate %18, %19, %20, %21 in 0 : vector<1x16x8xf32>, vector<1x16x8xf32>, vector<1x16x8xf32>, vector<1x16x8xf32> -> vector<4x16x8xf32>
    %23 = vector.extract_strided_slice %13 {offsets = [0, 32], sizes = [16, 8], strides = [1, 1]} : vector<16x96xf32> to vector<16x8xf32>
    %24 = vector.extract_strided_slice %13 {offsets = [0, 40], sizes = [16, 8], strides = [1, 1]} : vector<16x96xf32> to vector<16x8xf32>
    %25 = vector.extract_strided_slice %13 {offsets = [0, 48], sizes = [16, 8], strides = [1, 1]} : vector<16x96xf32> to vector<16x8xf32>
    %26 = vector.extract_strided_slice %13 {offsets = [0, 56], sizes = [16, 8], strides = [1, 1]} : vector<16x96xf32> to vector<16x8xf32>
    %27 = vector.shape_cast %23 : vector<16x8xf32> to vector<1x16x8xf32>
    %28 = vector.shape_cast %24 : vector<16x8xf32> to vector<1x16x8xf32>
    %29 = vector.shape_cast %25 : vector<16x8xf32> to vector<1x16x8xf32>
    %30 = vector.shape_cast %26 : vector<16x8xf32> to vector<1x16x8xf32>
    %31 = tpu.concatenate %27, %28, %29, %30 in 0 : vector<1x16x8xf32>, vector<1x16x8xf32>, vector<1x16x8xf32>, vector<1x16x8xf32> -> vector<4x16x8xf32>
    %32 = vector.extract_strided_slice %13 {offsets = [0, 64], sizes = [16, 8], strides = [1, 1]} : vector<16x96xf32> to vector<16x8xf32>
    %33 = vector.extract_strided_slice %13 {offsets = [0, 72], sizes = [16, 8], strides = [1, 1]} : vector<16x96xf32> to vector<16x8xf32>
    %34 = vector.extract_strided_slice %13 {offsets = [0, 80], sizes = [16, 8], strides = [1, 1]} : vector<16x96xf32> to vector<16x8xf32>
    %35 = vector.extract_strided_slice %13 {offsets = [0, 88], sizes = [16, 8], strides = [1, 1]} : vector<16x96xf32> to vector<16x8xf32>
    %36 = vector.shape_cast %32 : vector<16x8xf32> to vector<1x16x8xf32>
    %37 = vector.shape_cast %33 : vector<16x8xf32> to vector<1x16x8xf32>
    %38 = vector.shape_cast %34 : vector<16x8xf32> to vector<1x16x8xf32>
    %39 = vector.shape_cast %35 : vector<16x8xf32> to vector<1x16x8xf32>
    %40 = tpu.concatenate %36, %37, %38, %39 in 0 : vector<1x16x8xf32>, vector<1x16x8xf32>, vector<1x16x8xf32>, vector<1x16x8xf32> -> vector<4x16x8xf32>
    "tpu.trace_start"() <{level = 10 : i32, message = "nqh,nkh->nqk"}> : () -> ()
    %cst_12 = arith.constant dense<0.000000e+00> : vector<4x16x16xf32>
    %41 = tpu.matmul %22, %31, %cst_12 {dimension_numbers = #tpu.dot_dimension_numbers<[2], [2], [1], [1], [0, 0, 0, 1, 1, 1], [0], [0]>} : vector<4x16x8xf32>, vector<4x16x8xf32>, vector<4x16x16xf32> -> vector<4x16x16xf32>
    "tpu.trace_stop"() : () -> ()
    %42 = vector.shape_cast %6 : vector<16x16xf32> to vector<1x16x16xf32>
    %43 = vector.broadcast %42 : vector<1x16x16xf32> to vector<4x16x16xf32>
    %44 = arith.addf %41, %43 : vector<4x16x16xf32>
    %cst_13 = arith.constant dense<0xFF800000> : vector<4x16xf32>
    %45 = vector.multi_reduction <maximumf>, %44, %cst_13 [2] : vector<4x16x16xf32> to vector<4x16xf32>
    %46 = vector.shape_cast %45 : vector<4x16xf32> to vector<4x16x1xf32>
    %47 = vector.broadcast %46 : vector<4x16x1xf32> to vector<4x16x16xf32>
    %48 = arith.subf %44, %47 : vector<4x16x16xf32>
    %49 = math.exp %48 : vector<4x16x16xf32>
    %cst_14 = arith.constant dense<0.000000e+00> : vector<4x16xf32>
    %50 = vector.multi_reduction <add>, %49, %cst_14 [2] : vector<4x16x16xf32> to vector<4x16xf32>
    %51 = vector.shape_cast %50 : vector<4x16xf32> to vector<4x16x1xf32>
    %52 = tpu.reciprocal %51 {approx = true} : vector<4x16x1xf32> -> vector<4x16x1xf32>
    %53 = vector.broadcast %52 : vector<4x16x1xf32> to vector<4x16x16xf32>
    %54 = arith.mulf %49, %53 : vector<4x16x16xf32>
    "tpu.trace_start"() <{level = 10 : i32, message = "nqk,nkh->nqh"}> : () -> ()
    %cst_15 = arith.constant dense<0.000000e+00> : vector<4x16x8xf32>
    %55 = tpu.matmul %54, %40, %cst_15 {dimension_numbers = #tpu.dot_dimension_numbers<[2], [1], [1], [2], [0, 0, 0, 1, 1, 2], [0], [0]>} : vector<4x16x16xf32>, vector<4x16x8xf32>, vector<4x16x8xf32> -> vector<4x16x8xf32>
    "tpu.trace_stop"() : () -> ()
    %c0_16 = arith.constant 0 : index
    %c0_17 = arith.constant 0 : index
    %c0_18 = arith.constant 0 : index
    %c0_19 = arith.constant 0 : index
    %56 = vector.load %arg5[%c0_16, %c0_17, %c0_18, %c0_19] : memref<2x4x8x32xf32, #tpu.memory_space<vmem>>, vector<1x4x8x32xf32>
    %57 = vector.shape_cast %56 : vector<1x4x8x32xf32> to vector<4x8x32xf32>
    %cst_20 = arith.constant 0.000000e+00 : f32
    %58 = vector.broadcast %cst_20 : f32 to vector<16x32xf32>
    %59 = vector.extract_strided_slice %55 {offsets = [0, 0, 0], sizes = [1, 16, 8], strides = [1, 1, 1]} : vector<4x16x8xf32> to vector<1x16x8xf32>
    %60 = vector.shape_cast %59 : vector<1x16x8xf32> to vector<16x8xf32>
    %61 = vector.extract_strided_slice %57 {offsets = [0, 0, 0], sizes = [1, 8, 32], strides = [1, 1, 1]} : vector<4x8x32xf32> to vector<1x8x32xf32>
    %62 = vector.shape_cast %61 : vector<1x8x32xf32> to vector<8x32xf32>
    %cst_21 = arith.constant dense<0.000000e+00> : vector<16x32xf32>
    %63 = tpu.matmul %60, %62, %cst_21 {dimension_numbers = #tpu.dot_dimension_numbers<[1], [0], [0], [1], [0, 0, 1, 1], [], []>} : vector<16x8xf32>, vector<8x32xf32>, vector<16x32xf32> -> vector<16x32xf32>
    %64 = arith.addf %58, %63 : vector<16x32xf32>
    %65 = vector.extract_strided_slice %55 {offsets = [1, 0, 0], sizes = [1, 16, 8], strides = [1, 1, 1]} : vector<4x16x8xf32> to vector<1x16x8xf32>
    %66 = vector.shape_cast %65 : vector<1x16x8xf32> to vector<16x8xf32>
    %67 = vector.extract_strided_slice %57 {offsets = [1, 0, 0], sizes = [1, 8, 32], strides = [1, 1, 1]} : vector<4x8x32xf32> to vector<1x8x32xf32>
    %68 = vector.shape_cast %67 : vector<1x8x32xf32> to vector<8x32xf32>
    %cst_22 = arith.constant dense<0.000000e+00> : vector<16x32xf32>
    %69 = tpu.matmul %66, %68, %cst_22 {dimension_numbers = #tpu.dot_dimension_numbers<[1], [0], [0], [1], [0, 0, 1, 1], [], []>} : vector<16x8xf32>, vector<8x32xf32>, vector<16x32xf32> -> vector<16x32xf32>
    %70 = arith.addf %64, %69 : vector<16x32xf32>
    %71 = vector.extract_strided_slice %55 {offsets = [2, 0, 0], sizes = [1, 16, 8], strides = [1, 1, 1]} : vector<4x16x8xf32> to vector<1x16x8xf32>
    %72 = vector.shape_cast %71 : vector<1x16x8xf32> to vector<16x8xf32>
    %73 = vector.extract_strided_slice %57 {offsets = [2, 0, 0], sizes = [1, 8, 32], strides = [1, 1, 1]} : vector<4x8x32xf32> to vector<1x8x32xf32>
    %74 = vector.shape_cast %73 : vector<1x8x32xf32> to vector<8x32xf32>
    %cst_23 = arith.constant dense<0.000000e+00> : vector<16x32xf32>
    %75 = tpu.matmul %72, %74, %cst_23 {dimension_numbers = #tpu.dot_dimension_numbers<[1], [0], [0], [1], [0, 0, 1, 1], [], []>} : vector<16x8xf32>, vector<8x32xf32>, vector<16x32xf32> -> vector<16x32xf32>
    %76 = arith.addf %70, %75 : vector<16x32xf32>
    %77 = vector.extract_strided_slice %55 {offsets = [3, 0, 0], sizes = [1, 16, 8], strides = [1, 1, 1]} : vector<4x16x8xf32> to vector<1x16x8xf32>
    %78 = vector.shape_cast %77 : vector<1x16x8xf32> to vector<16x8xf32>
    %79 = vector.extract_strided_slice %57 {offsets = [3, 0, 0], sizes = [1, 8, 32], strides = [1, 1, 1]} : vector<4x8x32xf32> to vector<1x8x32xf32>
    %80 = vector.shape_cast %79 : vector<1x8x32xf32> to vector<8x32xf32>
    %cst_24 = arith.constant dense<0.000000e+00> : vector<16x32xf32>
    %81 = tpu.matmul %78, %80, %cst_24 {dimension_numbers = #tpu.dot_dimension_numbers<[1], [0], [0], [1], [0, 0, 1, 1], [], []>} : vector<16x8xf32>, vector<8x32xf32>, vector<16x32xf32> -> vector<16x32xf32>
    %82 = arith.addf %76, %81 : vector<16x32xf32>
    %c0_25 = arith.constant 0 : index
    %c0_26 = arith.constant 0 : index
    %c0_27 = arith.constant 0 : index
    %83 = vector.load %arg6[%c0_25, %c0_26, %c0_27] : memref<2x1x32xf32, #tpu.memory_space<vmem>>, vector<1x1x32xf32>
    %84 = vector.shape_cast %83 : vector<1x1x32xf32> to vector<1x32xf32>
    %85 = vector.broadcast %84 : vector<1x32xf32> to vector<16x32xf32>
    %86 = arith.addf %82, %85 : vector<16x32xf32>
    %87 = arith.addf %5, %86 : vector<16x32xf32>
    %cst_28 = arith.constant dense<0.000000e+00> : vector<16xf32>
    %88 = vector.multi_reduction <add>, %87, %cst_28 [1] : vector<16x32xf32> to vector<16xf32>
    %89 = vector.shape_cast %88 : vector<16xf32> to vector<16x1xf32>
    %cst_29 = arith.constant 3.200000e+01 : f32
    %90 = vector.broadcast %cst_29 : f32 to vector<16x1xf32>
    %91 = arith.divf %89, %90 : vector<16x1xf32>
    %92 = vector.broadcast %91 : vector<16x1xf32> to vector<16x32xf32>
    %93 = arith.subf %87, %92 : vector<16x32xf32>
    %94 = arith.mulf %93, %93 : vector<16x32xf32>
    %cst_30 = arith.constant dense<0.000000e+00> : vector<16xf32>
    %95 = vector.multi_reduction <add>, %94, %cst_30 [1] : vector<16x32xf32> to vector<16xf32>
    %96 = vector.shape_cast %95 : vector<16xf32> to vector<16x1xf32>
    %cst_31 = arith.constant 3.200000e+01 : f32
    %97 = vector.broadcast %cst_31 : f32 to vector<16x1xf32>
    %98 = arith.divf %96, %97 : vector<16x1xf32>
    %99 = vector.broadcast %91 : vector<16x1xf32> to vector<16x32xf32>
    %100 = arith.subf %87, %99 : vector<16x32xf32>
    %cst_32 = arith.constant 9.99999974E-6 : f32
    %101 = vector.broadcast %cst_32 : f32 to vector<16x1xf32>
    %102 = arith.addf %98, %101 : vector<16x1xf32>
    %103 = math.rsqrt %102 : vector<16x1xf32>
    %104 = vector.broadcast %103 : vector<16x1xf32> to vector<16x32xf32>
    %105 = arith.mulf %100, %104 : vector<16x32xf32>
    %c0_33 = arith.constant 0 : index
    %c0_34 = arith.constant 0 : index
    %c0_35 = arith.constant 0 : index
    %106 = vector.load %arg11[%c0_33, %c0_34, %c0_35] : memref<2x1x32xf32, #tpu.memory_space<vmem>>, vector<1x1x32xf32>
    %107 = vector.shape_cast %106 : vector<1x1x32xf32> to vector<1x32xf32>
    %108 = vector.broadcast %107 : vector<1x32xf32> to vector<16x32xf32>
    %109 = arith.mulf %105, %108 : vector<16x32xf32>
    %c0_36 = arith.constant 0 : index
    %c0_37 = arith.constant 0 : index
    %c0_38 = arith.constant 0 : index
    %110 = vector.load %arg12[%c0_36, %c0_37, %c0_38] : memref<2x1x32xf32, #tpu.memory_space<vmem>>, vector<1x1x32xf32>
    %111 = vector.shape_cast %110 : vector<1x1x32xf32> to vector<1x32xf32>
    %112 = vector.broadcast %111 : vector<1x32xf32> to vector<16x32xf32>
    %113 = arith.addf %109, %112 : vector<16x32xf32>
    %c0_39 = arith.constant 0 : index
    %c0_40 = arith.constant 0 : index
    %c0_41 = arith.constant 0 : index
    %114 = vector.load %arg7[%c0_39, %c0_40, %c0_41] : memref<2x32x64xf32, #tpu.memory_space<vmem>>, vector<1x32x64xf32>
    %115 = vector.shape_cast %114 : vector<1x32x64xf32> to vector<32x64xf32>
    %cst_42 = arith.constant dense<0.000000e+00> : vector<16x64xf32>
    %116 = tpu.matmul %113, %115, %cst_42 {dimension_numbers = #tpu.dot_dimension_numbers<[1], [0], [0], [1], [0, 0, 1, 1], [], []>} : vector<16x32xf32>, vector<32x64xf32>, vector<16x64xf32> -> vector<16x64xf32>
    %c0_43 = arith.constant 0 : index
    %c0_44 = arith.constant 0 : index
    %c0_45 = arith.constant 0 : index
    %117 = vector.load %arg8[%c0_43, %c0_44, %c0_45] : memref<2x1x64xf32, #tpu.memory_space<vmem>>, vector<1x1x64xf32>
    %118 = vector.shape_cast %117 : vector<1x1x64xf32> to vector<1x64xf32>
    %119 = vector.broadcast %118 : vector<1x64xf32> to vector<16x64xf32>
    %120 = arith.addf %116, %119 : vector<16x64xf32>
    %cst_46 = arith.constant 0.000000e+00 : f32
    %121 = vector.broadcast %cst_46 : f32 to vector<16x64xf32>
    %122 = arith.maximumf %120, %121 : vector<16x64xf32>
    %c0_47 = arith.constant 0 : index
    %c0_48 = arith.constant 0 : index
    %c0_49 = arith.constant 0 : index
    %123 = vector.load %arg9[%c0_47, %c0_48, %c0_49] : memref<2x64x32xf32, #tpu.memory_space<vmem>>, vector<1x64x32xf32>
    %124 = vector.shape_cast %123 : vector<1x64x32xf32> to vector<64x32xf32>
    %cst_50 = arith.constant dense<0.000000e+00> : vector<16x32xf32>
    %125 = tpu.matmul %122, %124, %cst_50 {dimension_numbers = #tpu.dot_dimension_numbers<[1], [0], [0], [1], [0, 0, 1, 1], [], []>} : vector<16x64xf32>, vector<64x32xf32>, vector<16x32xf32> -> vector<16x32xf32>
    %c0_51 = arith.constant 0 : index
    %c0_52 = arith.constant 0 : index
    %c0_53 = arith.constant 0 : index
    %126 = vector.load %arg10[%c0_51, %c0_52, %c0_53] : memref<2x1x32xf32, #tpu.memory_space<vmem>>, vector<1x1x32xf32>
    %127 = vector.shape_cast %126 : vector<1x1x32xf32> to vector<1x32xf32>
    %128 = vector.broadcast %127 : vector<1x32xf32> to vector<16x32xf32>
    %129 = arith.addf %125, %128 : vector<16x32xf32>
    %130 = arith.addf %113, %129 : vector<16x32xf32>
    %cst_54 = arith.constant dense<0.000000e+00> : vector<16xf32>
    %131 = vector.multi_reduction <add>, %130, %cst_54 [1] : vector<16x32xf32> to vector<16xf32>
    %132 = vector.shape_cast %131 : vector<16xf32> to vector<16x1xf32>
    %cst_55 = arith.constant 3.200000e+01 : f32
    %133 = vector.broadcast %cst_55 : f32 to vector<16x1xf32>
    %134 = arith.divf %132, %133 : vector<16x1xf32>
    %135 = vector.broadcast %134 : vector<16x1xf32> to vector<16x32xf32>
    %136 = arith.subf %130, %135 : vector<16x32xf32>
    %137 = arith.mulf %136, %136 : vector<16x32xf32>
    %cst_56 = arith.constant dense<0.000000e+00> : vector<16xf32>
    %138 = vector.multi_reduction <add>, %137, %cst_56 [1] : vector<16x32xf32> to vector<16xf32>
    %139 = vector.shape_cast %138 : vector<16xf32> to vector<16x1xf32>
    %cst_57 = arith.constant 3.200000e+01 : f32
    %140 = vector.broadcast %cst_57 : f32 to vector<16x1xf32>
    %141 = arith.divf %139, %140 : vector<16x1xf32>
    %142 = vector.broadcast %134 : vector<16x1xf32> to vector<16x32xf32>
    %143 = arith.subf %130, %142 : vector<16x32xf32>
    %cst_58 = arith.constant 9.99999974E-6 : f32
    %144 = vector.broadcast %cst_58 : f32 to vector<16x1xf32>
    %145 = arith.addf %141, %144 : vector<16x1xf32>
    %146 = math.rsqrt %145 : vector<16x1xf32>
    %147 = vector.broadcast %146 : vector<16x1xf32> to vector<16x32xf32>
    %148 = arith.mulf %143, %147 : vector<16x32xf32>
    %c0_59 = arith.constant 0 : index
    %c0_60 = arith.constant 0 : index
    %c0_61 = arith.constant 0 : index
    %149 = vector.load %arg13[%c0_59, %c0_60, %c0_61] : memref<2x1x32xf32, #tpu.memory_space<vmem>>, vector<1x1x32xf32>
    %150 = vector.shape_cast %149 : vector<1x1x32xf32> to vector<1x32xf32>
    %151 = vector.broadcast %150 : vector<1x32xf32> to vector<16x32xf32>
    %152 = arith.mulf %148, %151 : vector<16x32xf32>
    %c0_62 = arith.constant 0 : index
    %c0_63 = arith.constant 0 : index
    %c0_64 = arith.constant 0 : index
    %153 = vector.load %arg14[%c0_62, %c0_63, %c0_64] : memref<2x1x32xf32, #tpu.memory_space<vmem>>, vector<1x1x32xf32>
    %154 = vector.shape_cast %153 : vector<1x1x32xf32> to vector<1x32xf32>
    %155 = vector.broadcast %154 : vector<1x32xf32> to vector<16x32xf32>
    %156 = arith.addf %152, %155 : vector<16x32xf32>
    %c1 = arith.constant 1 : index
    %c0_65 = arith.constant 0 : index
    %c0_66 = arith.constant 0 : index
    %157 = vector.load %arg3[%c1, %c0_65, %c0_66] : memref<2x32x96xf32, #tpu.memory_space<vmem>>, vector<1x32x96xf32>
    %158 = vector.shape_cast %157 : vector<1x32x96xf32> to vector<32x96xf32>
    %cst_67 = arith.constant dense<0.000000e+00> : vector<16x96xf32>
    %159 = tpu.matmul %156, %158, %cst_67 {dimension_numbers = #tpu.dot_dimension_numbers<[1], [0], [0], [1], [0, 0, 1, 1], [], []>} : vector<16x32xf32>, vector<32x96xf32>, vector<16x96xf32> -> vector<16x96xf32>
    %c1_68 = arith.constant 1 : index
    %c0_69 = arith.constant 0 : index
    %c0_70 = arith.constant 0 : index
    %160 = vector.load %arg4[%c1_68, %c0_69, %c0_70] : memref<2x1x96xf32, #tpu.memory_space<vmem>>, vector<1x1x96xf32>
    %161 = vector.shape_cast %160 : vector<1x1x96xf32> to vector<1x96xf32>
    %162 = vector.broadcast %161 : vector<1x96xf32> to vector<16x96xf32>
    %163 = arith.addf %159, %162 : vector<16x96xf32>
    %164 = vector.extract_strided_slice %163 {offsets = [0, 0], sizes = [16, 8], strides = [1, 1]} : vector<16x96xf32> to vector<16x8xf32>
    %165 = vector.extract_strided_slice %163 {offsets = [0, 8], sizes = [16, 8], strides = [1, 1]} : vector<16x96xf32> to vector<16x8xf32>
    %166 = vector.extract_strided_slice %163 {offsets = [0, 16], sizes = [16, 8], strides = [1, 1]} : vector<16x96xf32> to vector<16x8xf32>
    %167 = vector.extract_strided_slice %163 {offsets = [0, 24], sizes = [16, 8], strides = [1, 1]} : vector<16x96xf32> to vector<16x8xf32>
    %168 = vector.shape_cast %164 : vector<16x8xf32> to vector<1x16x8xf32>
    %169 = vector.shape_cast %165 : vector<16x8xf32> to vector<1x16x8xf32>
    %170 = vector.shape_cast %166 : vector<16x8xf32> to vector<1x16x8xf32>
    %171 = vector.shape_cast %167 : vector<16x8xf32> to vector<1x16x8xf32>
    %172 = tpu.concatenate %168, %169, %170, %171 in 0 : vector<1x16x8xf32>, vector<1x16x8xf32>, vector<1x16x8xf32>, vector<1x16x8xf32> -> vector<4x16x8xf32>
    %173 = vector.extract_strided_slice %163 {offsets = [0, 32], sizes = [16, 8], strides = [1, 1]} : vector<16x96xf32> to vector<16x8xf32>
    %174 = vector.extract_strided_slice %163 {offsets = [0, 40], sizes = [16, 8], strides = [1, 1]} : vector<16x96xf32> to vector<16x8xf32>
    %175 = vector.extract_strided_slice %163 {offsets = [0, 48], sizes = [16, 8], strides = [1, 1]} : vector<16x96xf32> to vector<16x8xf32>
    %176 = vector.extract_strided_slice %163 {offsets = [0, 56], sizes = [16, 8], strides = [1, 1]} : vector<16x96xf32> to vector<16x8xf32>
    %177 = vector.shape_cast %173 : vector<16x8xf32> to vector<1x16x8xf32>
    %178 = vector.shape_cast %174 : vector<16x8xf32> to vector<1x16x8xf32>
    %179 = vector.shape_cast %175 : vector<16x8xf32> to vector<1x16x8xf32>
    %180 = vector.shape_cast %176 : vector<16x8xf32> to vector<1x16x8xf32>
    %181 = tpu.concatenate %177, %178, %179, %180 in 0 : vector<1x16x8xf32>, vector<1x16x8xf32>, vector<1x16x8xf32>, vector<1x16x8xf32> -> vector<4x16x8xf32>
    %182 = vector.extract_strided_slice %163 {offsets = [0, 64], sizes = [16, 8], strides = [1, 1]} : vector<16x96xf32> to vector<16x8xf32>
    %183 = vector.extract_strided_slice %163 {offsets = [0, 72], sizes = [16, 8], strides = [1, 1]} : vector<16x96xf32> to vector<16x8xf32>
    %184 = vector.extract_strided_slice %163 {offsets = [0, 80], sizes = [16, 8], strides = [1, 1]} : vector<16x96xf32> to vector<16x8xf32>
    %185 = vector.extract_strided_slice %163 {offsets = [0, 88], sizes = [16, 8], strides = [1, 1]} : vector<16x96xf32> to vector<16x8xf32>
    %186 = vector.shape_cast %182 : vector<16x8xf32> to vector<1x16x8xf32>
    %187 = vector.shape_cast %183 : vector<16x8xf32> to vector<1x16x8xf32>
    %188 = vector.shape_cast %184 : vector<16x8xf32> to vector<1x16x8xf32>
    %189 = vector.shape_cast %185 : vector<16x8xf32> to vector<1x16x8xf32>
    %190 = tpu.concatenate %186, %187, %188, %189 in 0 : vector<1x16x8xf32>, vector<1x16x8xf32>, vector<1x16x8xf32>, vector<1x16x8xf32> -> vector<4x16x8xf32>
    "tpu.trace_start"() <{level = 10 : i32, message = "nqh,nkh->nqk"}> : () -> ()
    %cst_71 = arith.constant dense<0.000000e+00> : vector<4x16x16xf32>
    %191 = tpu.matmul %172, %181, %cst_71 {dimension_numbers = #tpu.dot_dimension_numbers<[2], [2], [1], [1], [0, 0, 0, 1, 1, 1], [0], [0]>} : vector<4x16x8xf32>, vector<4x16x8xf32>, vector<4x16x16xf32> -> vector<4x16x16xf32>
    "tpu.trace_stop"() : () -> ()
    %192 = vector.shape_cast %6 : vector<16x16xf32> to vector<1x16x16xf32>
    %193 = vector.broadcast %192 : vector<1x16x16xf32> to vector<4x16x16xf32>
    %194 = arith.addf %191, %193 : vector<4x16x16xf32>
    %cst_72 = arith.constant dense<0xFF800000> : vector<4x16xf32>
    %195 = vector.multi_reduction <maximumf>, %194, %cst_72 [2] : vector<4x16x16xf32> to vector<4x16xf32>
    %196 = vector.shape_cast %195 : vector<4x16xf32> to vector<4x16x1xf32>
    %197 = vector.broadcast %196 : vector<4x16x1xf32> to vector<4x16x16xf32>
    %198 = arith.subf %194, %197 : vector<4x16x16xf32>
    %199 = math.exp %198 : vector<4x16x16xf32>
    %cst_73 = arith.constant dense<0.000000e+00> : vector<4x16xf32>
    %200 = vector.multi_reduction <add>, %199, %cst_73 [2] : vector<4x16x16xf32> to vector<4x16xf32>
    %201 = vector.shape_cast %200 : vector<4x16xf32> to vector<4x16x1xf32>
    %202 = tpu.reciprocal %201 {approx = true} : vector<4x16x1xf32> -> vector<4x16x1xf32>
    %203 = vector.broadcast %202 : vector<4x16x1xf32> to vector<4x16x16xf32>
    %204 = arith.mulf %199, %203 : vector<4x16x16xf32>
    "tpu.trace_start"() <{level = 10 : i32, message = "nqk,nkh->nqh"}> : () -> ()
    %cst_74 = arith.constant dense<0.000000e+00> : vector<4x16x8xf32>
    %205 = tpu.matmul %204, %190, %cst_74 {dimension_numbers = #tpu.dot_dimension_numbers<[2], [1], [1], [2], [0, 0, 0, 1, 1, 2], [0], [0]>} : vector<4x16x16xf32>, vector<4x16x8xf32>, vector<4x16x8xf32> -> vector<4x16x8xf32>
    "tpu.trace_stop"() : () -> ()
    %c1_75 = arith.constant 1 : index
    %c0_76 = arith.constant 0 : index
    %c0_77 = arith.constant 0 : index
    %c0_78 = arith.constant 0 : index
    %206 = vector.load %arg5[%c1_75, %c0_76, %c0_77, %c0_78] : memref<2x4x8x32xf32, #tpu.memory_space<vmem>>, vector<1x4x8x32xf32>
    %207 = vector.shape_cast %206 : vector<1x4x8x32xf32> to vector<4x8x32xf32>
    %cst_79 = arith.constant 0.000000e+00 : f32
    %208 = vector.broadcast %cst_79 : f32 to vector<16x32xf32>
    %209 = vector.extract_strided_slice %205 {offsets = [0, 0, 0], sizes = [1, 16, 8], strides = [1, 1, 1]} : vector<4x16x8xf32> to vector<1x16x8xf32>
    %210 = vector.shape_cast %209 : vector<1x16x8xf32> to vector<16x8xf32>
    %211 = vector.extract_strided_slice %207 {offsets = [0, 0, 0], sizes = [1, 8, 32], strides = [1, 1, 1]} : vector<4x8x32xf32> to vector<1x8x32xf32>
    %212 = vector.shape_cast %211 : vector<1x8x32xf32> to vector<8x32xf32>
    %cst_80 = arith.constant dense<0.000000e+00> : vector<16x32xf32>
    %213 = tpu.matmul %210, %212, %cst_80 {dimension_numbers = #tpu.dot_dimension_numbers<[1], [0], [0], [1], [0, 0, 1, 1], [], []>} : vector<16x8xf32>, vector<8x32xf32>, vector<16x32xf32> -> vector<16x32xf32>
    %214 = arith.addf %208, %213 : vector<16x32xf32>
    %215 = vector.extract_strided_slice %205 {offsets = [1, 0, 0], sizes = [1, 16, 8], strides = [1, 1, 1]} : vector<4x16x8xf32> to vector<1x16x8xf32>
    %216 = vector.shape_cast %215 : vector<1x16x8xf32> to vector<16x8xf32>
    %217 = vector.extract_strided_slice %207 {offsets = [1, 0, 0], sizes = [1, 8, 32], strides = [1, 1, 1]} : vector<4x8x32xf32> to vector<1x8x32xf32>
    %218 = vector.shape_cast %217 : vector<1x8x32xf32> to vector<8x32xf32>
    %cst_81 = arith.constant dense<0.000000e+00> : vector<16x32xf32>
    %219 = tpu.matmul %216, %218, %cst_81 {dimension_numbers = #tpu.dot_dimension_numbers<[1], [0], [0], [1], [0, 0, 1, 1], [], []>} : vector<16x8xf32>, vector<8x32xf32>, vector<16x32xf32> -> vector<16x32xf32>
    %220 = arith.addf %214, %219 : vector<16x32xf32>
    %221 = vector.extract_strided_slice %205 {offsets = [2, 0, 0], sizes = [1, 16, 8], strides = [1, 1, 1]} : vector<4x16x8xf32> to vector<1x16x8xf32>
    %222 = vector.shape_cast %221 : vector<1x16x8xf32> to vector<16x8xf32>
    %223 = vector.extract_strided_slice %207 {offsets = [2, 0, 0], sizes = [1, 8, 32], strides = [1, 1, 1]} : vector<4x8x32xf32> to vector<1x8x32xf32>
    %224 = vector.shape_cast %223 : vector<1x8x32xf32> to vector<8x32xf32>
    %cst_82 = arith.constant dense<0.000000e+00> : vector<16x32xf32>
    %225 = tpu.matmul %222, %224, %cst_82 {dimension_numbers = #tpu.dot_dimension_numbers<[1], [0], [0], [1], [0, 0, 1, 1], [], []>} : vector<16x8xf32>, vector<8x32xf32>, vector<16x32xf32> -> vector<16x32xf32>
    %226 = arith.addf %220, %225 : vector<16x32xf32>
    %227 = vector.extract_strided_slice %205 {offsets = [3, 0, 0], sizes = [1, 16, 8], strides = [1, 1, 1]} : vector<4x16x8xf32> to vector<1x16x8xf32>
    %228 = vector.shape_cast %227 : vector<1x16x8xf32> to vector<16x8xf32>
    %229 = vector.extract_strided_slice %207 {offsets = [3, 0, 0], sizes = [1, 8, 32], strides = [1, 1, 1]} : vector<4x8x32xf32> to vector<1x8x32xf32>
    %230 = vector.shape_cast %229 : vector<1x8x32xf32> to vector<8x32xf32>
    %cst_83 = arith.constant dense<0.000000e+00> : vector<16x32xf32>
    %231 = tpu.matmul %228, %230, %cst_83 {dimension_numbers = #tpu.dot_dimension_numbers<[1], [0], [0], [1], [0, 0, 1, 1], [], []>} : vector<16x8xf32>, vector<8x32xf32>, vector<16x32xf32> -> vector<16x32xf32>
    %232 = arith.addf %226, %231 : vector<16x32xf32>
    %c1_84 = arith.constant 1 : index
    %c0_85 = arith.constant 0 : index
    %c0_86 = arith.constant 0 : index
    %233 = vector.load %arg6[%c1_84, %c0_85, %c0_86] : memref<2x1x32xf32, #tpu.memory_space<vmem>>, vector<1x1x32xf32>
    %234 = vector.shape_cast %233 : vector<1x1x32xf32> to vector<1x32xf32>
    %235 = vector.broadcast %234 : vector<1x32xf32> to vector<16x32xf32>
    %236 = arith.addf %232, %235 : vector<16x32xf32>
    %237 = arith.addf %156, %236 : vector<16x32xf32>
    %cst_87 = arith.constant dense<0.000000e+00> : vector<16xf32>
    %238 = vector.multi_reduction <add>, %237, %cst_87 [1] : vector<16x32xf32> to vector<16xf32>
    %239 = vector.shape_cast %238 : vector<16xf32> to vector<16x1xf32>
    %cst_88 = arith.constant 3.200000e+01 : f32
    %240 = vector.broadcast %cst_88 : f32 to vector<16x1xf32>
    %241 = arith.divf %239, %240 : vector<16x1xf32>
    %242 = vector.broadcast %241 : vector<16x1xf32> to vector<16x32xf32>
    %243 = arith.subf %237, %242 : vector<16x32xf32>
    %244 = arith.mulf %243, %243 : vector<16x32xf32>
    %cst_89 = arith.constant dense<0.000000e+00> : vector<16xf32>
    %245 = vector.multi_reduction <add>, %244, %cst_89 [1] : vector<16x32xf32> to vector<16xf32>
    %246 = vector.shape_cast %245 : vector<16xf32> to vector<16x1xf32>
    %cst_90 = arith.constant 3.200000e+01 : f32
    %247 = vector.broadcast %cst_90 : f32 to vector<16x1xf32>
    %248 = arith.divf %246, %247 : vector<16x1xf32>
    %249 = vector.broadcast %241 : vector<16x1xf32> to vector<16x32xf32>
    %250 = arith.subf %237, %249 : vector<16x32xf32>
    %cst_91 = arith.constant 9.99999974E-6 : f32
    %251 = vector.broadcast %cst_91 : f32 to vector<16x1xf32>
    %252 = arith.addf %248, %251 : vector<16x1xf32>
    %253 = math.rsqrt %252 : vector<16x1xf32>
    %254 = vector.broadcast %253 : vector<16x1xf32> to vector<16x32xf32>
    %255 = arith.mulf %250, %254 : vector<16x32xf32>
    %c1_92 = arith.constant 1 : index
    %c0_93 = arith.constant 0 : index
    %c0_94 = arith.constant 0 : index
    %256 = vector.load %arg11[%c1_92, %c0_93, %c0_94] : memref<2x1x32xf32, #tpu.memory_space<vmem>>, vector<1x1x32xf32>
    %257 = vector.shape_cast %256 : vector<1x1x32xf32> to vector<1x32xf32>
    %258 = vector.broadcast %257 : vector<1x32xf32> to vector<16x32xf32>
    %259 = arith.mulf %255, %258 : vector<16x32xf32>
    %c1_95 = arith.constant 1 : index
    %c0_96 = arith.constant 0 : index
    %c0_97 = arith.constant 0 : index
    %260 = vector.load %arg12[%c1_95, %c0_96, %c0_97] : memref<2x1x32xf32, #tpu.memory_space<vmem>>, vector<1x1x32xf32>
    %261 = vector.shape_cast %260 : vector<1x1x32xf32> to vector<1x32xf32>
    %262 = vector.broadcast %261 : vector<1x32xf32> to vector<16x32xf32>
    %263 = arith.addf %259, %262 : vector<16x32xf32>
    %c1_98 = arith.constant 1 : index
    %c0_99 = arith.constant 0 : index
    %c0_100 = arith.constant 0 : index
    %264 = vector.load %arg7[%c1_98, %c0_99, %c0_100] : memref<2x32x64xf32, #tpu.memory_space<vmem>>, vector<1x32x64xf32>
    %265 = vector.shape_cast %264 : vector<1x32x64xf32> to vector<32x64xf32>
    %cst_101 = arith.constant dense<0.000000e+00> : vector<16x64xf32>
    %266 = tpu.matmul %263, %265, %cst_101 {dimension_numbers = #tpu.dot_dimension_numbers<[1], [0], [0], [1], [0, 0, 1, 1], [], []>} : vector<16x32xf32>, vector<32x64xf32>, vector<16x64xf32> -> vector<16x64xf32>
    %c1_102 = arith.constant 1 : index
    %c0_103 = arith.constant 0 : index
    %c0_104 = arith.constant 0 : index
    %267 = vector.load %arg8[%c1_102, %c0_103, %c0_104] : memref<2x1x64xf32, #tpu.memory_space<vmem>>, vector<1x1x64xf32>
    %268 = vector.shape_cast %267 : vector<1x1x64xf32> to vector<1x64xf32>
    %269 = vector.broadcast %268 : vector<1x64xf32> to vector<16x64xf32>
    %270 = arith.addf %266, %269 : vector<16x64xf32>
    %cst_105 = arith.constant 0.000000e+00 : f32
    %271 = vector.broadcast %cst_105 : f32 to vector<16x64xf32>
    %272 = arith.maximumf %270, %271 : vector<16x64xf32>
    %c1_106 = arith.constant 1 : index
    %c0_107 = arith.constant 0 : index
    %c0_108 = arith.constant 0 : index
    %273 = vector.load %arg9[%c1_106, %c0_107, %c0_108] : memref<2x64x32xf32, #tpu.memory_space<vmem>>, vector<1x64x32xf32>
    %274 = vector.shape_cast %273 : vector<1x64x32xf32> to vector<64x32xf32>
    %cst_109 = arith.constant dense<0.000000e+00> : vector<16x32xf32>
    %275 = tpu.matmul %272, %274, %cst_109 {dimension_numbers = #tpu.dot_dimension_numbers<[1], [0], [0], [1], [0, 0, 1, 1], [], []>} : vector<16x64xf32>, vector<64x32xf32>, vector<16x32xf32> -> vector<16x32xf32>
    %c1_110 = arith.constant 1 : index
    %c0_111 = arith.constant 0 : index
    %c0_112 = arith.constant 0 : index
    %276 = vector.load %arg10[%c1_110, %c0_111, %c0_112] : memref<2x1x32xf32, #tpu.memory_space<vmem>>, vector<1x1x32xf32>
    %277 = vector.shape_cast %276 : vector<1x1x32xf32> to vector<1x32xf32>
    %278 = vector.broadcast %277 : vector<1x32xf32> to vector<16x32xf32>
    %279 = arith.addf %275, %278 : vector<16x32xf32>
    %280 = arith.addf %263, %279 : vector<16x32xf32>
    %cst_113 = arith.constant dense<0.000000e+00> : vector<16xf32>
    %281 = vector.multi_reduction <add>, %280, %cst_113 [1] : vector<16x32xf32> to vector<16xf32>
    %282 = vector.shape_cast %281 : vector<16xf32> to vector<16x1xf32>
    %cst_114 = arith.constant 3.200000e+01 : f32
    %283 = vector.broadcast %cst_114 : f32 to vector<16x1xf32>
    %284 = arith.divf %282, %283 : vector<16x1xf32>
    %285 = vector.broadcast %284 : vector<16x1xf32> to vector<16x32xf32>
    %286 = arith.subf %280, %285 : vector<16x32xf32>
    %287 = arith.mulf %286, %286 : vector<16x32xf32>
    %cst_115 = arith.constant dense<0.000000e+00> : vector<16xf32>
    %288 = vector.multi_reduction <add>, %287, %cst_115 [1] : vector<16x32xf32> to vector<16xf32>
    %289 = vector.shape_cast %288 : vector<16xf32> to vector<16x1xf32>
    %cst_116 = arith.constant 3.200000e+01 : f32
    %290 = vector.broadcast %cst_116 : f32 to vector<16x1xf32>
    %291 = arith.divf %289, %290 : vector<16x1xf32>
    %292 = vector.broadcast %284 : vector<16x1xf32> to vector<16x32xf32>
    %293 = arith.subf %280, %292 : vector<16x32xf32>
    %cst_117 = arith.constant 9.99999974E-6 : f32
    %294 = vector.broadcast %cst_117 : f32 to vector<16x1xf32>
    %295 = arith.addf %291, %294 : vector<16x1xf32>
    %296 = math.rsqrt %295 : vector<16x1xf32>
    %297 = vector.broadcast %296 : vector<16x1xf32> to vector<16x32xf32>
    %298 = arith.mulf %293, %297 : vector<16x32xf32>
    %c1_118 = arith.constant 1 : index
    %c0_119 = arith.constant 0 : index
    %c0_120 = arith.constant 0 : index
    %299 = vector.load %arg13[%c1_118, %c0_119, %c0_120] : memref<2x1x32xf32, #tpu.memory_space<vmem>>, vector<1x1x32xf32>
    %300 = vector.shape_cast %299 : vector<1x1x32xf32> to vector<1x32xf32>
    %301 = vector.broadcast %300 : vector<1x32xf32> to vector<16x32xf32>
    %302 = arith.mulf %298, %301 : vector<16x32xf32>
    %c1_121 = arith.constant 1 : index
    %c0_122 = arith.constant 0 : index
    %c0_123 = arith.constant 0 : index
    %303 = vector.load %arg14[%c1_121, %c0_122, %c0_123] : memref<2x1x32xf32, #tpu.memory_space<vmem>>, vector<1x1x32xf32>
    %304 = vector.shape_cast %303 : vector<1x1x32xf32> to vector<1x32xf32>
    %305 = vector.broadcast %304 : vector<1x32xf32> to vector<16x32xf32>
    %306 = arith.addf %302, %305 : vector<16x32xf32>
    %307 = vector.shape_cast %306 : vector<16x32xf32> to vector<2x8x32xf32>
    %c0_124 = arith.constant 0 : index
    %c0_125 = arith.constant 0 : index
    %c0_126 = arith.constant 0 : index
    %308 = vector.load %arg15[%c0_124, %c0_125, %c0_126] : memref<2x8x32xf32, #tpu.memory_space<vmem>>, vector<2x8x32xf32>
    tpu.vector_store %arg15[%c0_124, %c0_125, %c0_126], %307 {strides = array<i32>} : memref<2x8x32xf32, #tpu.memory_space<vmem>>, vector<2x8x32xf32>,
    return
  }
}

</mosaic_0001>

<bundles_post_ra>
// kernel: tpu_custom_call.1
= control target key start
LH: loop header
LB: loop body
LE: loop exit
PB: predicated region body
PF: predicated region fallthrough
CT: control target
= control target key end

     0   :  { %20 = vsyncpa [#allocation3], 0  ;;  %s4441_s0 = inlined_call_operand.hbm [shape: f32[2,8,32], index: 0, kind: input, shape index: {}]   ;;  %s4442_s1 = inlined_call_operand.hbm [shape: f32[8,32], index: 1, kind: input, shape index: {}]   ;;  %s4443_s2 = inlined_call_operand.hbm [shape: f32[16,16], index: 2, kind: input, shape index: {}]   ;;  %s4444_s3 = inlined_call_operand.vmem [shape: f32[2,32,96], index: 3, kind: input, shape index: {}]   ;;  %s4445_s4 = inlined_call_operand.vmem [shape: f32[2,1,96], index: 4, kind: input, shape index: {}]   ;;  %s4446_s5 = inlined_call_operand.vmem [shape: f32[2,4,8,32], index: 5, kind: input, shape index: {}]   ;;  %s4447_s6 = inlined_call_operand.vmem [shape: f32[2,1,32], index: 6, kind: input, shape index: {}]   ;;  %s4448_s7 = inlined_call_operand.vmem [shape: f32[2,32,64], index: 7, kind: input, shape index: {}]   ;;  %s4449_s8 = inlined_call_operand.vmem [shape: f32[2,1,64], index: 8, kind: input, shape index: {}]   ;;  %s4450_s9 = inlined_call_operand.vmem [shape: f32[2,64,32], index: 9, kind: input, shape index: {}]   ;;  %s4451_s10 = inlined_call_operand.vmem [shape: f32[2,1,32], index: 10, kind: input, shape index: {}]   ;;  %s4452_s11 = inlined_call_operand.vmem [shape: f32[2,1,32], index: 11, kind: input, shape index: {}]   ;;  %s4453_s12 = inlined_call_operand.vmem [shape: f32[2,1,32], index: 12, kind: input, shape index: {}]   ;;  %s4454_s13 = inlined_call_operand.vmem [shape: f32[2,1,32], index: 13, kind: input, shape index: {}]   ;;  %s4455_s14 = inlined_call_operand.vmem [shape: f32[2,1,32], index: 14, kind: input, shape index: {}]   ;;  %s4456_s15 = inlined_call_operand.hbm [shape: f32[2,8,32], index: 15, kind: output, shape index: {}]  }
   0x1   :  { %21 = vsyncpa [#allocation6], 0 }
   0x2   :  { %22 = vsyncpa [#allocation4], 0  ;;  %s3823_s18 = smov [#allocation5]   ;;  %s3824_s20 = smov [#allocation2]  }
   0x3   :  { %s41_s19 = sshll.u32 %s3823_s18, 4  ;;  %s28_s21 = sshll.u32 %s3824_s20, 4  ;;  %s42_s19 = int_to_ptr.vmem [resolvable:$true] %s41_s19  ;;  %s29_s21 = int_to_ptr.vmem [resolvable:$true] %s28_s21 }
   0x4   :  { %s3745_s22 = scalar_lea.vmem %s42_s19, 128  ;;  %p3750_p1 = scmp.lt.s32.totalorder %s42_s19, %s42_s19 }
   0x5   :  { %p3746_p0 = scmp.ne.s32.totalorder %s42_s19, %s3745_s22  ;;  %p3751_p2 = scmp.lt.s32.totalorder %s3745_s22, %s3745_s22 }
   0x7   :  { %p3752_p3 = por %p3751_p2, %p3750_p1 }
   0x9   :  { %p3753_p4 = pnand %p3752_p3, %p3746_p0 }
   0xb   :  { %3756 = shalt.err (!%p3753_p4)
}
   0xc   :  { %44 = dma.hbm_to_vmem [thread:$0]  %s4442_s1, 128, %s42_s19, [#allocation6]  }
   0xd   :  { %s3765_s25 = scalar_lea.vmem %s29_s21, 256  ;;  %p3770_p6 = scmp.lt.s32.totalorder %s29_s21, %s29_s21 }
   0xe   :  { %p3766_p5 = scmp.ne.s32.totalorder %s29_s21, %s3765_s25  ;;  %p3771_p7 = scmp.lt.s32.totalorder %s3765_s25, %s3765_s25 }
  0x10   :  { %p3772_p8 = por %p3771_p7, %p3770_p6 }
  0x12   :  { %p3773_p9 = pnand %p3772_p8, %p3766_p5 }
  0x14   :  { %3776 = shalt.err (!%p3773_p9)
}
  0x15   :  { %s3825_s26 = smov 128   ;;  %s3826_s27 = smov 8  }
  0x16   :  { %34 = dma.hbm_to_vmem [thread:$0]  %s4441_s0, 256, %s29_s21, [#allocation3], %s3825_s26, %s3825_s26, %s3826_s27  }
  0x17   :  { %s3827_s30 = smov [#allocation7]  }
  0x18   :  { %s50_s16 = sshll.u32 %s3827_s30, 4  ;;  %s51_s16 = int_to_ptr.vmem [resolvable:$true] %s50_s16 }
  0x19   :  { %s3785_s1 = scalar_lea.vmem %s51_s16, 256  ;;  %p3790_p11 = scmp.lt.s32.totalorder %s51_s16, %s51_s16 }
  0x1a   :  { %p3786_p10 = scmp.ne.s32.totalorder %s51_s16, %s3785_s1  ;;  %p3791_p12 = scmp.lt.s32.totalorder %s3785_s1, %s3785_s1 }
  0x1c   :  { %p3792_p13 = por %p3791_p12, %p3790_p11 }
  0x1e   :  { %p3793_p0 = pnand %p3792_p13, %p3786_p10 }
  0x20   :  { %3796 = shalt.err (!%p3793_p0)
}
  0x21   :  { %56 = dma.hbm_to_vmem [thread:$0]  %s4443_s2, 256, %s51_s16, [#allocation6], %s3825_s26, %s3825_s26, %s3826_s27  }
  0x22   :  { %3817 = dma.done.wait [#allocation3], 256  }
  0x23   :  { %3818 = vsyncadd [#allocation3], 4294967040 }
  0x24   :  { %3819 = dma.done.wait [#allocation6], 384  }
  0x25   :  { %3820 = vsyncadd [#allocation6], 4294966912  ;;  %v100_v0 = vld [vmem:[%s4444_s3 + $0x18] sm:$0xff]  ;;  %v99_v1 = vld [vmem:[%s4444_s3 + $0x10] sm:$0xff]  ;;  %vm108_vm0 = vcmask 261120   ;;  %vm208_vm1 = vcmask 64512  }
  0x26   :  { %3412 = vmatprep.subr.mxu0 %v100_v0  ;;  %v90_v2 = vld [vmem:[#allocation2] sm:$0xff]  ;;  %v98_v3 = vld [vmem:[%s4444_s3 + $0x8] sm:$0xff]  ;;  %v92_v5 = vld [vmem:[#allocation5] sm:$0xff]  ;;  %s3828_s29 = smov 112   ;;  %s3829_s30 = smov 120   ;;  %vm553_vm2 = vcmask 130048  }
  0x27   :  { %3413 = vmatpush3.msra.mxu0 %v100_v0  ;;  %v91_v4 = vld [vmem:[#allocation2 + $0x8] sm:$0xff]  ;;  %v3938_v6 = vadd.f32 %v92_v5, %v90_v2  ;;  %v97_v7 = vld [vmem:[%s4444_s3] sm:$0xff]  ;;  %s3830_s16 = smov 104   ;;  %s3831_s1 = smov 96   ;;  %v4030_v30 = vld [vmem:[#allocation7] sm:$0xff]  ;;  %vm1487_vm3 = vcmask 523264  }
  0x28   :  { %3414 = vmatprep.subr.mxu0 %v99_v1  ;;  %v3943_v8 = vadd.f32 %v92_v5, %v91_v4  ;;  %v3160_v9 = vld [vmem:[%s4445_s4] ss:$0 sm:$0xff]  ;;  %s3832_s17 = smov 64  }
  0x29   :  { %3415 = vmatpush3.msra.mxu0 %v99_v1  ;;  %3420 = vmatprep.mubr.msk.f32.mxu0 %vm108_vm0, %v3938_v6  ;;  %v4028_v28 = vld [vmem:[#allocation7 + $0x8] sm:$0xff] }
  0x2a   :  { %3416 = vmatprep.subr.mxu0 %v98_v3 }
  0x2b   :  { %3417 = vmatpush3.msra.mxu0 %v98_v3 }
  0x2c   :  { %3418 = vmatprep.subr.mxu0 %v97_v7 }
  0x2d   :  { %3419 = vmatpush3.msra.mxu0 %v97_v7 }
  0x2e   :  { %3421 = vmatmul.mubr.msk.f32.vlgmr.msra.gmra.mxu0 %vm108_vm0, %v3943_v8 }
  0xee   :  { %v3422_v10 = vpop.f32.mrf.mxu0 }
  0xef   :  { %v3952_v11 = vadd.f32 %v3422_v10, %v3160_v9 }
  0xf0   :  { %v181_v12 = vpop.f32.mrf.mxu0 }
  0xf1   :  { %v3954_v13 = vadd.f32 %v3160_v9, %v181_v12  ;;  %198 = vrot.lane.b32.xlu1 %v3952_v11, %s3828_s29  ;;  %194 = vrot.lane.b32.xlu0 %v3952_v11, %s3829_s30 }
  0xf3   :  { %3427 = vmatprep.mubr.msk.f32.mxu1 %vm208_vm1, %v3954_v13 }
  0xf5   :  { %202 = vrot.lane.b32.xlu1 %v3952_v11, %s3830_s16  ;;  %192 = vrot.lane.b32.xlu0 %v3954_v13, %s3829_s30 }
  0xf9   :  { %200 = vrot.lane.b32.xlu1 %v3954_v13, %s3830_s16  ;;  %196 = vrot.lane.b32.xlu0 %v3954_v13, %s3828_s29 }
  0xfd   :  { %206 = vrot.lane.b32.xlu0 %v3952_v11, %s3831_s1 }
 0x101   :  { %204 = vrot.lane.b32.xlu0 %v3954_v13, %s3831_s1 }
 0x163   :  { %v3974_v14 = vpop.permute.xlu1 %198  ;;  %v3976_v15 = vpop.permute.xlu0 %194 }
 0x164   :  { %294 = vrot.lane.b32.xlu1 %v3976_v15, %s3831_s1  ;;  %381 = vrot.lane.b32.xlu0 %v3974_v14, %s3831_s1 }
 0x167   :  { %v3982_v16 = vpop.permute.xlu0 %192  ;;  %v3988_v17 = vpop.permute.xlu1 %202 }
 0x168   :  { %3434 = vmatprep.mubr.msk.f32.mxu0 %vm208_vm1, %v3982_v16  ;;  %292 = vrot.lane.b32.xlu1 %v3982_v16, %s3831_s1 }
 0x16b   :  { %v3990_v18 = vpop.permute.xlu0 %196  ;;  %v3996_v19 = vpop.permute.xlu1 %200 }
 0x16c   :  { %468 = vrot.lane.b32.xlu1 %v3988_v17, %s3831_s1  ;;  %379 = vrot.lane.b32.xlu0 %v3990_v18, %s3831_s1 }
 0x16f   :  { %v207_v20 = vpop.permute.xlu0 %206 }
 0x170   :  { %466 = vrot.lane.b32.xlu1 %v3996_v19, %s3831_s1  ;;  %3423 = vmatprep.subr.msk.mxu1 %vm208_vm1, %v207_v20 }
 0x171   :  { %3424 = vmatpush3.xpose.msk.msra.mxu1 %vm208_vm1, %v207_v20 }
 0x173   :  { %v205_v21 = vpop.permute.xlu0 %204 }
 0x174   :  { %3425 = vmatprep.subr.msk.mxu1 %vm208_vm1, %v205_v21 }
 0x175   :  { %3426 = vmatpush3.xpose.msk.msra.mxu1 %vm208_vm1, %v205_v21 }
 0x178   :  { %3428 = vmatmul.mubr.msk.f32.vlgmr.msra.gmra.mxu1 %vm208_vm1, %v3952_v11 }
 0x179   :  { %3441 = vmatprep.mubr.msk.f32.mxu1 %vm208_vm1, %v3990_v18 }
 0x1d6   :  { %v295_v22 = vpop.permute.xlu1 %294  ;;  %v382_v23 = vpop.permute.xlu0 %381 }
 0x1d7   :  { %3430 = vmatprep.subr.msk.mxu0 %vm208_vm1, %v295_v22  ;;  %3437 = vmatprep.subr.msk.mxu1 %vm208_vm1, %v382_v23 }
 0x1d8   :  { %3431 = vmatpush3.xpose.msk.msra.mxu0 %vm208_vm1, %v295_v22  ;;  %3438 = vmatpush3.xpose.msk.msra.mxu1 %vm208_vm1, %v382_v23 }
 0x1da   :  { %v293_v24 = vpop.permute.xlu1 %292 }
 0x1db   :  { %3432 = vmatprep.subr.msk.mxu0 %vm208_vm1, %v293_v24 }
 0x1dc   :  { %3433 = vmatpush3.xpose.msk.msra.mxu0 %vm208_vm1, %v293_v24 }
 0x1de   :  { %v469_v25 = vpop.permute.xlu1 %468  ;;  %v380_v26 = vpop.permute.xlu0 %379 }
 0x1df   :  { %3435 = vmatmul.mubr.msk.f32.vlgmr.msra.gmra.mxu0 %vm208_vm1, %v3976_v15  ;;  %3439 = vmatprep.subr.msk.mxu1 %vm208_vm1, %v380_v26 }
 0x1e0   :  { %3444 = vmatprep.subr.msk.mxu0 %vm208_vm1, %v469_v25  ;;  %3440 = vmatpush3.xpose.msk.msra.mxu1 %vm208_vm1, %v380_v26 }
 0x1e1   :  { %3445 = vmatpush3.xpose.msk.msra.mxu0 %vm208_vm1, %v469_v25  ;;  %3448 = vmatprep.mubr.msk.f32.mxu0 %vm208_vm1, %v3996_v19 }
 0x1e2   :  { %v467_v27 = vpop.permute.xlu1 %466 }
 0x1e3   :  { %3442 = vmatmul.mubr.msk.f32.vlgmr.msra.gmra.mxu1 %vm208_vm1, %v3974_v14  ;;  %3446 = vmatprep.subr.msk.mxu0 %vm208_vm1, %v467_v27 }
 0x1e5   :  { %3447 = vmatpush3.xpose.msk.msra.mxu0 %vm208_vm1, %v467_v27 }
 0x1e8   :  { %3449 = vmatmul.mubr.msk.f32.vlgmr.msra.gmra.mxu0 %vm208_vm1, %v3988_v17 }
 0x238   :  { %v3429_v29 = vpop.f32.mrf.mxu1 }
 0x239   :  { %v289_v31 = vadd.f32 %v3429_v29, %v4028_v28 }
 0x23a   :  { %v283_v32 = vpop.f32.mrf.mxu1 }
 0x23b   :  { %v284_v33 = vadd.f32 %v283_v32, %v4030_v30  ;;  %v557_v34 = vsel %vm553_vm2, %v289_v31, -inf }
 0x23c   :  { %558 = vmax.xlane.f32.xlu0 %v557_v34 }
 0x23d   :  { %v554_v35 = vsel %vm553_vm2, %v284_v33, -inf }
 0x240   :  { %555 = vmax.xlane.f32.xlu0 %v554_v35 }
 0x29f   :  { %v3436_v36 = vpop.f32.mrf.mxu0 }
 0x2a0   :  { %v376_v37 = vadd.f32 %v3436_v36, %v4028_v28 }
 0x2a1   :  { %v370_v38 = vpop.f32.mrf.mxu0 }
 0x2a2   :  { %v371_v39 = vadd.f32 %v370_v38, %v4030_v30  ;;  %v563_v40 = vsel %vm553_vm2, %v376_v37, -inf }
 0x2a3   :  { %v3443_v41 = vpop.f32.mrf.mxu1  ;;  %564 = vmax.xlane.f32.xlu0 %v563_v40 }
 0x2a4   :  { %v463_v42 = vadd.f32 %v3443_v41, %v4028_v28  ;;  %v560_v43 = vsel %vm553_vm2, %v371_v39, -inf }
 0x2a5   :  { %561 = vmax.xlane.f32.xlu1 %v560_v43  ;;  %v457_v44 = vpop.f32.mrf.mxu1 }
 0x2a6   :  { %v458_v45 = vadd.f32 %v457_v44, %v4030_v30  ;;  %v569_v46 = vsel %vm553_vm2, %v463_v42, -inf }
 0x2a7   :  { %570 = vmax.xlane.f32.xlu0 %v569_v46 }
 0x2a8   :  { %v3450_v47 = vpop.f32.mrf.mxu0  ;;  %v566_v48 = vsel %vm553_vm2, %v458_v45, -inf }
 0x2a9   :  { %v550_v49 = vadd.f32 %v3450_v47, %v4028_v28  ;;  %567 = vmax.xlane.f32.xlu1 %v566_v48 }
 0x2aa   :  { %v544_v50 = vpop.f32.mrf.mxu0 }
 0x2ab   :  { %v545_v51 = vadd.f32 %v544_v50, %v4030_v30  ;;  %v575_v52 = vsel %vm553_vm2, %v550_v49, -inf }
 0x2ac   :  { %576 = vmax.xlane.f32.xlu0 %v575_v52 }
 0x2ad   :  { %v572_v53 = vsel %vm553_vm2, %v545_v51, -inf }
 0x2ae   :  { %573 = vmax.xlane.f32.xlu1 %v572_v53 }
 0x2bf   :  { %644 = vrot.lane.b32.xlu1 %v3952_v11, %s3832_s17 }
 0x2c2   :  { %731 = vrot.lane.b32.xlu0 %v3976_v15, %s3832_s17 }
 0x2c3   :  { %642 = vrot.lane.b32.xlu1 %v3954_v13, %s3832_s17 }
 0x2c5   :  { %v559_v54 = vpop.xlane.xlu0 %558 }
 0x2c6   :  { %818 = vrot.lane.b32.xlu0 %v3974_v14, %s3832_s17  ;;  %v579_v55 = vsub.f32 %v289_v31, %v559_v54 }
 0x2c7   :  { %729 = vrot.lane.b32.xlu1 %v3982_v16, %s3832_s17 }
 0x2c8   :  { %v588_v57 = vmul.f32 1.442695, %v579_v55 }
 0x2c9   :  { %v556_v56 = vpop.xlane.xlu0 %555 }
 0x2ca   :  { %v578_v58 = vsub.f32 %v284_v33, %v556_v56  ;;  %3657 = vpow2.f32 %v588_v57 }
 0x2cb   :  { %816 = vrot.lane.b32.xlu1 %v3990_v18, %s3832_s17 }
 0x2cc   :  { %v586_v59 = vmul.f32 1.442695, %v578_v58 }
 0x2ce   :  { %3659 = vpow2.f32 %v586_v59 }
 0x2d7   :  { %v4060_v60 = vpop.eup %3657 }
 0x2d8   :  { %v605_v61 = vsel %vm553_vm2, %v4060_v60, 0.0 }
 0x2db   :  { %v4064_v62 = vpop.eup %3659 }
 0x2dc   :  { %v602_v63 = vsel %vm553_vm2, %v4064_v62, 0.0 }
 0x2ef   :  { %606 = vadd.xlane.f32.xlu1 %v605_v61 }
 0x2f3   :  { %603 = vadd.xlane.f32.xlu1 %v602_v63 }
 0x32c   :  { %v565_v0 = vpop.xlane.xlu0 %564 }
 0x32d   :  { %v581_v1 = vsub.f32 %v376_v37, %v565_v0 }
 0x32e   :  { %v562_v2 = vpop.xlane.xlu1 %561 }
 0x32f   :  { %v592_v3 = vmul.f32 1.442695, %v581_v1  ;;  %v580_v4 = vsub.f32 %v371_v39, %v562_v2  ;;  %v990_v2 = vld [vmem:[%s4446_s5] sm:$0xff] }
 0x330   :  { %v571_v5 = vpop.xlane.xlu0 %570 }
 0x331   :  { %3661 = vpow2.f32 %v592_v3  ;;  %v583_v7 = vsub.f32 %v463_v42, %v571_v5  ;;  %v590_v9 = vmul.f32 1.442695, %v580_v4  ;;  %v991_v3 = vld [vmem:[%s4446_s5 + $0x8] sm:$0xff]  ;;  %v992_v4 = vld [vmem:[%s4446_s5 + $0x10] sm:$0xff]  ;;  %v993_v5 = vld [vmem:[%s4446_s5 + $0x18] sm:$0xff] }
 0x332   :  { %v568_v10 = vpop.xlane.xlu1 %567 }
 0x333   :  { %v596_v11 = vmul.f32 1.442695, %v583_v7  ;;  %v582_v12 = vsub.f32 %v458_v45, %v568_v10 }
 0x335   :  { %3663 = vpow2.f32 %v596_v11  ;;  %v594_v13 = vmul.f32 1.442695, %v582_v12  ;;  %v577_v14 = vpop.xlane.xlu0 %576 }
 0x336   :  { %3665 = vpow2.f32 %v590_v9  ;;  %v585_v15 = vsub.f32 %v550_v49, %v577_v14 }
 0x337   :  { %3667 = vpow2.f32 %v594_v13  ;;  %v574_v16 = vpop.xlane.xlu1 %573 }
 0x338   :  { %v600_v18 = vmul.f32 1.442695, %v585_v15  ;;  %v584_v20 = vsub.f32 %v545_v51, %v574_v16 }
 0x339   :  { %v732_v21 = vpop.permute.xlu0 %731 }
 0x33a   :  { %v598_v22 = vmul.f32 1.442695, %v584_v20  ;;  %3458 = vmatprep.subr.mxu1 %v732_v21  ;;  %3669 = vpow2.f32 %v600_v18 }
 0x33b   :  { %v645_v23 = vpop.permute.xlu1 %644  ;;  %3459 = vmatpush3.msra.mxu1 %v732_v21 }
 0x33c   :  { %3671 = vpow2.f32 %v598_v22  ;;  %3451 = vmatprep.subr.mxu0 %v645_v23 }
 0x33d   :  { %3452 = vmatpush3.msra.mxu0 %v645_v23  ;;  %v819_v27 = vpop.permute.xlu0 %818 }
 0x33e   :  { %v4068_v24 = vpop.eup %3661 }
 0x33f   :  { %v643_v25 = vpop.permute.xlu1 %642  ;;  %v611_v26 = vsel %vm553_vm2, %v4068_v24, 0.0 }
 0x340   :  { %3453 = vmatprep.subr.mxu0 %v643_v25  ;;  %612 = vadd.xlane.f32.xlu0 %v611_v26 }
 0x341   :  { %3454 = vmatpush3.msra.mxu0 %v643_v25 }
 0x342   :  { %v3664_v29 = vpop.eup %3663  ;;  %3465 = vmatprep.subr.mxu0 %v819_v27 }
 0x343   :  { %v3666_v31 = vpop.eup %3665  ;;  %v730_v32 = vpop.permute.xlu1 %729  ;;  %v617_v33 = vsel %vm553_vm2, %v3664_v29, 0.0 }
 0x344   :  { %v3668_v34 = vpop.eup %3667  ;;  %3460 = vmatprep.subr.mxu1 %v730_v32  ;;  %618 = vadd.xlane.f32.xlu0 %v617_v33  ;;  %v608_v36 = vsel %vm553_vm2, %v3666_v31, 0.0 }
 0x345   :  { %3461 = vmatpush3.msra.mxu1 %v730_v32  ;;  %v614_v35 = vsel %vm553_vm2, %v3668_v34, 0.0 }
 0x346   :  { %615 = vadd.xlane.f32.xlu1 %v614_v35 }
 0x347   :  { %v3670_v37 = vpop.eup %3669  ;;  %v817_v41 = vpop.permute.xlu1 %816 }
 0x348   :  { %609 = vadd.xlane.f32.xlu0 %v608_v36  ;;  %v623_v40 = vsel %vm553_vm2, %v3670_v37, 0.0 }
 0x349   :  { %v3672_v38 = vpop.eup %3671 }
 0x34a   :  { %v620_v39 = vsel %vm553_vm2, %v3672_v38, 0.0 }
 0x34b   :  { %621 = vadd.xlane.f32.xlu1 %v620_v39 }
 0x34c   :  { %624 = vadd.xlane.f32.xlu0 %v623_v40 }
 0x35c   :  { %903 = vrot.lane.b32.xlu1 %v3996_v19, %s3832_s17 }
 0x362   :  { %905 = vrot.lane.b32.xlu0 %v3988_v17, %s3832_s17 }
 0x378   :  { %v607_v42 = vpop.xlane.xlu1 %606 }
 0x379   :  { %3673 = vrcp.f32 %v607_v42 }
 0x37c   :  { %v604_v43 = vpop.xlane.xlu1 %603 }
 0x37d   :  { %3675 = vrcp.f32 %v604_v43 }
 0x386   :  { %v3674_v44 = vpop.eup %3673 }
 0x387   :  { %v635_v47 = vmul.f32 %v3674_v44, %v4060_v60 }
 0x38a   :  { %v3676_v45 = vpop.eup %3675 }
 0x38b   :  { %v634_v46 = vmul.f32 %v3676_v45, %v4064_v62 }
 0x38d   :  { %3455 = vmatprep.mubr.msk.f32.mxu0 %vm553_vm2, %v634_v46 }
 0x38e   :  { %3456 = vmatmul.mubr.msk.f32.vlgmr.msra.gmra.mxu0 %vm553_vm2, %v635_v47 }
 0x38f   :  { %3466 = vmatpush3.msra.mxu0 %v819_v27  ;;  %v3195_v27 = vld [vmem:[%s4447_s6] ss:$0 sm:$0xff] }
 0x390   :  { %3467 = vmatprep.subr.mxu0 %v817_v41 }
 0x391   :  { %3468 = vmatpush3.msra.mxu0 %v817_v41 }
 0x392   :  { %3479 = vmatprep.subr.mxu0 %v991_v3 }
 0x3c9   :  { %v613_v19 = vpop.xlane.xlu0 %612 }
 0x3cd   :  { %v619_v17 = vpop.xlane.xlu0 %618 }
 0x3ce   :  { %3677 = vrcp.f32 %v619_v17 }
 0x3cf   :  { %v616_v48 = vpop.xlane.xlu1 %615 }
 0x3d0   :  { %3679 = vrcp.f32 %v616_v48  ;;  %v1380_v48 = vld [vmem:[%s4448_s7 + $0x10] sm:$0xff] }
 0x3d1   :  { %3681 = vrcp.f32 %v613_v19  ;;  %v610_v49 = vpop.xlane.xlu0 %609 }
 0x3d2   :  { %3683 = vrcp.f32 %v610_v49  ;;  %v1379_v49 = vld [vmem:[%s4448_s7 + $0x8] sm:$0xff] }
 0x3d4   :  { %v622_v50 = vpop.xlane.xlu1 %621 }
 0x3d5   :  { %3685 = vrcp.f32 %v622_v50  ;;  %v625_v51 = vpop.xlane.xlu0 %624  ;;  %v1378_v50 = vld [vmem:[%s4448_s7] sm:$0xff] }
 0x3d6   :  { %3687 = vrcp.f32 %v625_v51  ;;  %v1479_v51 = vld [vmem:[%s4450_s9 + $0x38] sm:$0xff] }
 0x3d8   :  { %v904_v0 = vpop.permute.xlu1 %903 }
 0x3d9   :  { %v906_v52 = vpop.permute.xlu0 %905 }
 0x3da   :  { %3472 = vmatprep.subr.mxu1 %v906_v52 }
 0x3db   :  { %v3678_v53 = vpop.eup %3677 }
 0x3dc   :  { %v639_v58 = vmul.f32 %v3678_v53, %v3664_v29  ;;  %v1477_v53 = vld [vmem:[%s4450_s9 + $0x28] sm:$0xff] }
 0x3dd   :  { %v3680_v54 = vpop.eup %3679 }
 0x3de   :  { %v3682_v55 = vpop.eup %3681  ;;  %v638_v56 = vmul.f32 %v3680_v54, %v3668_v34  ;;  %v1476_v54 = vld [vmem:[%s4450_s9 + $0x20] sm:$0xff] }
 0x3df   :  { %v3684_v57 = vpop.eup %3683  ;;  %v637_v60 = vmul.f32 %v3682_v55, %v4068_v24 }
 0x3e0   :  { %3469 = vmatprep.mubr.msk.f32.mxu0 %vm553_vm2, %v638_v56  ;;  %v636_v59 = vmul.f32 %v3684_v57, %v3666_v31 }
 0x3e1   :  { %3470 = vmatmul.mubr.msk.f32.vlgmr.msra.gmra.mxu0 %vm553_vm2, %v639_v58 }
 0x3e2   :  { %v3686_v61 = vpop.eup %3685  ;;  %3462 = vmatprep.mubr.msk.f32.mxu1 %vm553_vm2, %v636_v59  ;;  %3480 = vmatpush3.msra.mxu0 %v991_v3 }
 0x3e3   :  { %v3688_v62 = vpop.eup %3687  ;;  %3463 = vmatmul.mubr.msk.f32.vlgmr.msra.gmra.mxu1 %vm553_vm2, %v637_v60  ;;  %v640_v63 = vmul.f32 %v3686_v61, %v3672_v38  ;;  %3489 = vmatprep.subr.mxu0 %v992_v4 }
 0x3e4   :  { %3473 = vmatpush3.msra.mxu1 %v906_v52  ;;  %v641_v1 = vmul.f32 %v3688_v62, %v3670_v37  ;;  %v1478_v52 = vld [vmem:[%s4450_s9 + $0x30] sm:$0xff]  ;;  %v3196_v62 = vld [vmem:[%s4452_s11] ss:$0 sm:$0xff] }
 0x3e5   :  { %3474 = vmatprep.subr.mxu1 %v904_v0  ;;  %3476 = vmatprep.mubr.msk.f32.mxu1 %vm553_vm2, %v640_v63 }
 0x3e6   :  { %3475 = vmatpush3.msra.mxu1 %v904_v0  ;;  %v3197_v0 = vld [vmem:[%s4453_s12] ss:$0 sm:$0xff] }
 0x3e7   :  { %3477 = vmatmul.mubr.msk.f32.vlgmr.msra.gmra.mxu1 %vm553_vm2, %v641_v1  ;;  %3484 = vmatprep.subr.mxu1 %v990_v2 }
 0x3e8   :  { %3485 = vmatpush3.msra.mxu1 %v990_v2 }
 0x3e9   :  { %3494 = vmatprep.subr.mxu1 %v993_v5 }
 0x44e   :  { %v3457_v7 = vpop.f32.mrf.mxu0 }
 0x450   :  { %v720_v9 = vpop.f32.mrf.mxu0 }
 0x451   :  { %3486 = vmatprep.mubr.msk.f32.mxu1 %vm208_vm1, %v720_v9  ;;  %v1475_v9 = vld [vmem:[%s4450_s9 + $0x18] sm:$0xff] }
 0x452   :  { %3487 = vmatmul.mubr.msk.f32.vlgmr.msra.gmra.mxu1 %vm208_vm1, %v3457_v7 }
 0x453   :  { %3495 = vmatpush3.msra.mxu1 %v993_v5 }
 0x454   :  { %3510 = vmatprep.subr.mxu1 %v1479_v51 }
 0x4a1   :  { %v3471_v10 = vpop.f32.mrf.mxu0 }
 0x4a3   :  { %v3464_v11 = vpop.f32.mrf.mxu1  ;;  %v894_v13 = vpop.f32.mrf.mxu0 }
 0x4a5   :  { %v807_v12 = vpop.f32.mrf.mxu1 }
 0x4a6   :  { %3481 = vmatprep.mubr.msk.f32.mxu0 %vm208_vm1, %v807_v12  ;;  %v1472_v12 = vld [vmem:[%s4450_s9] sm:$0xff] }
 0x4a7   :  { %v3478_v14 = vpop.f32.mrf.mxu1  ;;  %3482 = vmatmul.mubr.msk.f32.vlgmr.msra.gmra.mxu0 %vm208_vm1, %v3464_v11  ;;  %v1473_v11 = vld [vmem:[%s4450_s9 + $0x8] sm:$0xff] }
 0x4a8   :  { %3490 = vmatpush3.msra.mxu0 %v992_v4  ;;  %3491 = vmatprep.mubr.msk.f32.mxu0 %vm208_vm1, %v894_v13  ;;  %v3198_v13 = vld [vmem:[%s4449_s8] ss:$0 sm:$0xff] }
 0x4a9   :  { %v981_v15 = vpop.f32.mrf.mxu1 }
 0x4aa   :  { %3496 = vmatprep.mubr.msk.f32.mxu1 %vm208_vm1, %v981_v15 }
 0x4ab   :  { %3492 = vmatmul.mubr.msk.f32.vlgmr.msra.gmra.mxu0 %vm208_vm1, %v3471_v10  ;;  %3497 = vmatmul.mubr.msk.f32.vlgmr.msra.gmra.mxu1 %vm208_vm1, %v3478_v14  ;;  %v1474_v10 = vld [vmem:[%s4450_s9 + $0x10] sm:$0xff] }
 0x4ac   :  { %3511 = vmatpush3.msra.mxu1 %v1479_v51  ;;  %v3204_v51 = vld [vmem:[%s4454_s13] ss:$0 sm:$0xff] }
 0x4ad   :  { %3512 = vmatprep.subr.mxu1 %v1478_v52 }
 0x4ae   :  { %3513 = vmatpush3.msra.mxu1 %v1478_v52 }
 0x4af   :  { %3514 = vmatprep.subr.mxu1 %v1477_v53 }
 0x4b0   :  { %3515 = vmatpush3.msra.mxu1 %v1477_v53 }
 0x4b1   :  { %3516 = vmatprep.subr.mxu1 %v1476_v54 }
 0x4b2   :  { %3517 = vmatpush3.msra.mxu1 %v1476_v54 }
 0x4b3   :  { %3518 = vmatprep.subr.mxu1 %v1475_v9 }
 0x4b4   :  { %3519 = vmatpush3.msra.mxu1 %v1475_v9 }
 0x4b5   :  { %3520 = vmatprep.subr.mxu1 %v1474_v10 }
 0x4b6   :  { %3521 = vmatpush3.msra.mxu1 %v1474_v10 }
 0x4b7   :  { %3522 = vmatprep.subr.mxu1 %v1473_v11 }
 0x4b8   :  { %3523 = vmatpush3.msra.mxu1 %v1473_v11 }
 0x4b9   :  { %3524 = vmatprep.subr.mxu1 %v1472_v12 }
 0x4ba   :  { %3525 = vmatpush3.msra.mxu1 %v1472_v12 }
 0x512   :  { %v3488_v16 = vpop.f32.mrf.mxu1 }
 0x514   :  { %v1147_v20 = vpop.f32.mrf.mxu1 }
 0x567   :  { %v3483_v18 = vpop.f32.mrf.mxu0 }
 0x568   :  { %v1153_v22 = vadd.f32 %v3488_v16, %v3483_v18 }
 0x569   :  { %v1066_v21 = vpop.f32.mrf.mxu0 }
 0x56a   :  { %v1148_v25 = vadd.f32 %v1147_v20, %v1066_v21 }
 0x56b   :  { %v3493_v23 = vpop.f32.mrf.mxu0  ;;  %v3498_v24 = vpop.f32.mrf.mxu1 }
 0x56c   :  { %v1238_v26 = vadd.f32 %v3493_v23, %v1153_v22  ;;  %v3201_v22 = vld [vmem:[%s4451_s10] ss:$0 sm:$0xff] }
 0x56d   :  { %v1228_v29 = vpop.f32.mrf.mxu0  ;;  %v1311_v33 = vpop.f32.mrf.mxu1 }
 0x56e   :  { %v1321_v31 = vadd.f32 %v3498_v24, %v1238_v26  ;;  %v1237_v32 = vadd.f32 %v1228_v29, %v1148_v25 }
 0x570   :  { %v1330_v34 = vadd.f32 %v3195_v27, %v1321_v31  ;;  %v1320_v35 = vadd.f32 %v1311_v33, %v1237_v32 }
 0x572   :  { %v1329_v36 = vadd.f32 %v3195_v27, %v1320_v35  ;;  %v1332_v37 = vadd.f32 %v1330_v34, %v3943_v8 }
 0x574   :  { %v1336_v38 = vsel %vm108_vm0, %v1332_v37, 0.0  ;;  %v1331_v39 = vadd.f32 %v1329_v36, %v3938_v6  ;;  %v1381_v6 = vld [vmem:[%s4448_s7 + $0x18] sm:$0xff] }
 0x575   :  { %1337 = vadd.xlane.f32.xlu1 %v1336_v38  ;;  %3499 = vmatprep.subr.mxu0 %v1381_v6 }
 0x576   :  { %v1333_v40 = vsel %vm108_vm0, %v1331_v39, 0.0  ;;  %3500 = vmatpush3.msra.mxu0 %v1381_v6 }
 0x577   :  { %1334 = vadd.xlane.f32.xlu0 %v1333_v40  ;;  %3501 = vmatprep.subr.mxu0 %v1380_v48 }
 0x578   :  { %3502 = vmatpush3.msra.mxu0 %v1380_v48 }
 0x579   :  { %3503 = vmatprep.subr.mxu0 %v1379_v49 }
 0x57a   :  { %3504 = vmatpush3.msra.mxu0 %v1379_v49 }
 0x57b   :  { %3505 = vmatprep.subr.mxu0 %v1378_v50 }
 0x57c   :  { %3506 = vmatpush3.msra.mxu0 %v1378_v50 }
 0x5fe   :  { %v1338_v41 = vpop.xlane.xlu1 %1337 }
 0x5ff   :  { %v1341_v42 = vmul.f32 0.03125, %v1338_v41 }
 0x600   :  { %v1335_v43 = vpop.xlane.xlu0 %1334 }
 0x601   :  { %v1340_v44 = vmul.f32 0.03125, %v1335_v43  ;;  %v1343_v45 = vsub.f32 %v1332_v37, %v1341_v42  ;;  %v3209_v43 = vld [vmem:[%s4444_s3 + $0x38] sm:$0xff] }
 0x602   :  { %3529 = vmatprep.subr.mxu0 %v3209_v43 }
 0x603   :  { %v1342_v46 = vsub.f32 %v1331_v39, %v1340_v44  ;;  %v1345_v17 = vmul.f32 %v1343_v45, %v1343_v45  ;;  %v3208_v44 = vld [vmem:[%s4444_s3 + $0x30] sm:$0xff] }
 0x605   :  { %v1344_v47 = vmul.f32 %v1342_v46, %v1342_v46  ;;  %v1349_v8 = vsel %vm108_vm0, %v1345_v17, 0.0 }
 0x607   :  { %v1346_v19 = vsel %vm108_vm0, %v1344_v47, 0.0 }
 0x608   :  { %1347 = vadd.xlane.f32.xlu0 %v1346_v19 }
 0x60c   :  { %1350 = vadd.xlane.f32.xlu0 %v1349_v8 }
 0x691   :  { %v1348_v55 = vpop.xlane.xlu0 %1347 }
 0x692   :  { %v1352_v56 = vmul.f32 0.03125, %v1348_v55 }
 0x694   :  { %v1354_v57 = vadd.f32 1e-05, %v1352_v56  ;;  %v3205_v56 = vld [vmem:[%s4455_s14] ss:$0 sm:$0xff] }
 0x695   :  { %v1351_v58 = vpop.xlane.xlu0 %1350 }
 0x696   :  { %3689 = vrsqrt.f32 %v1354_v57  ;;  %v1353_v59 = vmul.f32 0.03125, %v1351_v58 }
 0x698   :  { %v1355_v60 = vadd.f32 1e-05, %v1353_v59  ;;  %v3211_v59 = vld [vmem:[%s4445_s4 + $0x1] ss:$0 sm:$0xff]  ;;  %s3833_s4 = smov [#allocation8]  }
 0x69a   :  { %3691 = vrsqrt.f32 %v1355_v60 }
 0x6a3   :  { %v3690_v61 = vpop.eup %3689 }
 0x6a4   :  { %v1358_v63 = vmul.f32 %v3690_v61, %v1342_v46  ;;  %v3206_v46 = vld [vmem:[%s4444_s3 + $0x20] sm:$0xff] }
 0x6a6   :  { %v1367_v1 = vmul.f32 %v3196_v62, %v1358_v63 }
 0x6a7   :  { %v3692_v2 = vpop.eup %3691 }
 0x6a8   :  { %v1359_v3 = vmul.f32 %v3692_v2, %v1343_v45  ;;  %v1376_v4 = vadd.f32 %v3197_v0, %v1367_v1  ;;  %v3207_v45 = vld [vmem:[%s4444_s3 + $0x28] sm:$0xff] }
 0x6aa   :  { %v1368_v5 = vmul.f32 %v3196_v62, %v1359_v3  ;;  %3507 = vmatprep.mubr.msk.f32.mxu0 %vm108_vm0, %v1376_v4 }
 0x6ac   :  { %v1377_v7 = vadd.f32 %v3197_v0, %v1368_v5 }
 0x6ae   :  { %3508 = vmatmul.mubr.msk.f32.vlgmr.msra.gmra.mxu0 %vm108_vm0, %v1377_v7 }
 0x6af   :  { %3530 = vmatpush3.msra.mxu0 %v3209_v43 }
 0x6b0   :  { %3531 = vmatprep.subr.mxu0 %v3208_v44 }
 0x6b1   :  { %3532 = vmatpush3.msra.mxu0 %v3208_v44 }
 0x6b2   :  { %3533 = vmatprep.subr.mxu0 %v3207_v45 }
 0x6b3   :  { %3534 = vmatpush3.msra.mxu0 %v3207_v45 }
 0x6b4   :  { %3535 = vmatprep.subr.mxu0 %v3206_v46 }
 0x6b5   :  { %3536 = vmatpush3.msra.mxu0 %v3206_v46 }
 0x76e   :  { %v3509_v14 = vpop.f32.mrf.mxu0 }
 0x76f   :  { %v1467_v15 = vadd.f32 %v3509_v14, %v3198_v13 }
 0x770   :  { %v1461_v16 = vpop.f32.mrf.mxu0 }
 0x771   :  { %v1462_v18 = vadd.f32 %v3198_v13, %v1461_v16  ;;  %v1471_v21 = vmax.f32 %v1467_v15, 0.0 }
 0x773   :  { %v1470_v20 = vmax.f32 %v1462_v18, 0.0 }
 0x775   :  { %3526 = vmatprep.mubr.msk.f32.mxu1 %vm1487_vm3, %v1470_v20 }
 0x776   :  { %3527 = vmatmul.mubr.msk.f32.vlgmr.msra.gmra.mxu1 %vm1487_vm3, %v1471_v21 }
 0x836   :  { %v3528_v23 = vpop.f32.mrf.mxu1 }
 0x837   :  { %v1566_v24 = vadd.f32 %v3528_v23, %v3201_v22 }
 0x838   :  { %v1560_v25 = vpop.f32.mrf.mxu1 }
 0x839   :  { %v1561_v26 = vadd.f32 %v3201_v22, %v1560_v25  ;;  %v1570_v27 = vadd.f32 %v1566_v24, %v1377_v7 }
 0x83b   :  { %v1574_v29 = vsel %vm108_vm0, %v1570_v27, 0.0  ;;  %v1569_v31 = vadd.f32 %v1561_v26, %v1376_v4 }
 0x83c   :  { %1575 = vadd.xlane.f32.xlu0 %v1574_v29 }
 0x83d   :  { %v1571_v32 = vsel %vm108_vm0, %v1569_v31, 0.0 }
 0x83e   :  { %1572 = vadd.xlane.f32.xlu1 %v1571_v32 }
 0x8c5   :  { %v1576_v33 = vpop.xlane.xlu0 %1575 }
 0x8c6   :  { %v1578_v34 = vmul.f32 0.03125, %v1576_v33 }
 0x8c7   :  { %v1573_v35 = vpop.xlane.xlu1 %1572 }
 0x8c8   :  { %v1580_v36 = vsub.f32 %v1570_v27, %v1578_v34  ;;  %v1577_v37 = vmul.f32 0.03125, %v1573_v35 }
 0x8ca   :  { %v1579_v38 = vsub.f32 %v1569_v31, %v1577_v37  ;;  %v1582_v39 = vmul.f32 %v1580_v36, %v1580_v36 }
 0x8cc   :  { %v1586_v40 = vsel %vm108_vm0, %v1582_v39, 0.0  ;;  %v1581_v41 = vmul.f32 %v1579_v38, %v1579_v38 }
 0x8cd   :  { %1587 = vadd.xlane.f32.xlu0 %v1586_v40 }
 0x8ce   :  { %v1583_v42 = vsel %vm108_vm0, %v1581_v41, 0.0 }
 0x8cf   :  { %1584 = vadd.xlane.f32.xlu1 %v1583_v42 }
 0x956   :  { %v1588_v47 = vpop.xlane.xlu0 %1587 }
 0x957   :  { %v1590_v19 = vmul.f32 0.03125, %v1588_v47 }
 0x958   :  { %v1585_v17 = vpop.xlane.xlu1 %1584 }
 0x959   :  { %v1592_v8 = vadd.f32 1e-05, %v1590_v19  ;;  %v1589_v6 = vmul.f32 0.03125, %v1585_v17 }
 0x95b   :  { %3693 = vrsqrt.f32 %v1592_v8  ;;  %v1591_v48 = vadd.f32 1e-05, %v1589_v6 }
 0x95d   :  { %3695 = vrsqrt.f32 %v1591_v48 }
 0x968   :  { %v3694_v49 = vpop.eup %3693 }
 0x969   :  { %v1596_v50 = vmul.f32 %v3694_v49, %v1580_v36 }
 0x96a   :  { %v3696_v52 = vpop.eup %3695 }
 0x96b   :  { %v1595_v53 = vmul.f32 %v3696_v52, %v1579_v38  ;;  %v1605_v54 = vmul.f32 %v3204_v51, %v1596_v50 }
 0x96d   :  { %v1604_v55 = vmul.f32 %v3204_v51, %v1595_v53  ;;  %v4197_v58 = vadd.f32 %v3205_v56, %v1605_v54 }
 0x96f   :  { %v4195_v57 = vadd.f32 %v3205_v56, %v1604_v55 }
 0x971   :  { %3537 = vmatprep.mubr.msk.f32.mxu0 %vm108_vm0, %v4195_v57 }
 0x972   :  { %3538 = vmatmul.mubr.msk.f32.vlgmr.msra.gmra.mxu0 %vm108_vm0, %v4197_v58 }
 0xa32   :  { %v3539_v60 = vpop.f32.mrf.mxu0 }
 0xa33   :  { %v4206_v61 = vadd.f32 %v3539_v60, %v3211_v59 }
 0xa34   :  { %v1700_v62 = vpop.f32.mrf.mxu0 }
 0xa35   :  { %v4208_v63 = vadd.f32 %v3211_v59, %v1700_v62  ;;  %1713 = vrot.lane.b32.xlu1 %v4206_v61, %s3829_s30 }
 0xa37   :  { %1711 = vrot.lane.b32.xlu0 %v4208_v63, %s3829_s30  ;;  %3544 = vmatprep.mubr.msk.f32.mxu0 %vm208_vm1, %v4208_v63 }
 0xa39   :  { %1717 = vrot.lane.b32.xlu1 %v4206_v61, %s3828_s29 }
 0xa3b   :  { %1715 = vrot.lane.b32.xlu0 %v4208_v63, %s3828_s29  ;;  %s3147_s29 = sshll.u32 %s3833_s4, 4  ;;  %s3148_s29 = int_to_ptr.vmem [resolvable:$true] %s3147_s29 }
 0xa3c   :  { %s3797_s30 = scalar_lea.vmem %s3148_s29, 256  ;;  %p3802_p2 = scmp.lt.s32.totalorder %s3148_s29, %s3148_s29 }
 0xa3d   :  { %1721 = vrot.lane.b32.xlu1 %v4206_v61, %s3830_s16  ;;  %p3798_p1 = scmp.ne.s32.totalorder %s3148_s29, %s3797_s30  ;;  %p3803_p3 = scmp.lt.s32.totalorder %s3797_s30, %s3797_s30 }
 0xa3f   :  { %1725 = vrot.lane.b32.xlu0 %v4206_v61, %s3831_s1  ;;  %p3804_p4 = por %p3803_p3, %p3802_p2 }
 0xa41   :  { %1719 = vrot.lane.b32.xlu1 %v4208_v63, %s3830_s16  ;;  %p3805_p5 = pnand %p3804_p4, %p3798_p1 }
 0xa43   :  { %1723 = vrot.lane.b32.xlu0 %v4208_v63, %s3831_s1 }
 0xaa7   :  { %v4228_v0 = vpop.permute.xlu1 %1713 }
 0xaa8   :  { %1812 = vrot.lane.b32.xlu1 %v4228_v0, %s3831_s1 }
 0xaa9   :  { %v4232_v1 = vpop.permute.xlu0 %1711 }
 0xaaa   :  { %3551 = vmatprep.mubr.msk.f32.mxu1 %vm208_vm1, %v4232_v1 }
 0xaab   :  { %v4236_v2 = vpop.permute.xlu1 %1717 }
 0xaac   :  { %1899 = vrot.lane.b32.xlu0 %v4236_v2, %s3831_s1  ;;  %1810 = vrot.lane.b32.xlu1 %v4232_v1, %s3831_s1 }
 0xaad   :  { %v4242_v3 = vpop.permute.xlu0 %1715 }
 0xaaf   :  { %v4244_v4 = vpop.permute.xlu1 %1721 }
 0xab0   :  { %1986 = vrot.lane.b32.xlu1 %v4244_v4, %s3831_s1  ;;  %1897 = vrot.lane.b32.xlu0 %v4242_v3, %s3831_s1 }
 0xab1   :  { %v1726_v5 = vpop.permute.xlu0 %1725 }
 0xab2   :  { %3540 = vmatprep.subr.msk.mxu0 %vm208_vm1, %v1726_v5 }
 0xab3   :  { %v4251_v7 = vpop.permute.xlu1 %1719  ;;  %3541 = vmatpush3.xpose.msk.msra.mxu0 %vm208_vm1, %v1726_v5 }
 0xab4   :  { %1984 = vrot.lane.b32.xlu1 %v4251_v7, %s3831_s1 }
 0xab5   :  { %v1724_v9 = vpop.permute.xlu0 %1723 }
 0xab6   :  { %3542 = vmatprep.subr.msk.mxu0 %vm208_vm1, %v1724_v9 }
 0xab7   :  { %3543 = vmatpush3.xpose.msk.msra.mxu0 %vm208_vm1, %v1724_v9 }
 0xaba   :  { %3545 = vmatmul.mubr.msk.f32.vlgmr.msra.gmra.mxu0 %vm208_vm1, %v4206_v61 }
 0xabb   :  { %3558 = vmatprep.mubr.msk.f32.mxu0 %vm208_vm1, %v4242_v3 }
 0xb1a   :  { %v1813_v10 = vpop.permute.xlu1 %1812 }
 0xb1b   :  { %3547 = vmatprep.subr.msk.mxu1 %vm208_vm1, %v1813_v10 }
 0xb1c   :  { %3548 = vmatpush3.xpose.msk.msra.mxu1 %vm208_vm1, %v1813_v10 }
 0xb1e   :  { %v1811_v11 = vpop.permute.xlu1 %1810  ;;  %v1900_v12 = vpop.permute.xlu0 %1899 }
 0xb1f   :  { %3549 = vmatprep.subr.msk.mxu1 %vm208_vm1, %v1811_v11  ;;  %3554 = vmatprep.subr.msk.mxu0 %vm208_vm1, %v1900_v12 }
 0xb20   :  { %3550 = vmatpush3.xpose.msk.msra.mxu1 %vm208_vm1, %v1811_v11  ;;  %3555 = vmatpush3.xpose.msk.msra.mxu0 %vm208_vm1, %v1900_v12 }
 0xb22   :  { %v1987_v13 = vpop.permute.xlu1 %1986  ;;  %v1898_v14 = vpop.permute.xlu0 %1897 }
 0xb23   :  { %3552 = vmatmul.mubr.msk.f32.vlgmr.msra.gmra.mxu1 %vm208_vm1, %v4228_v0  ;;  %3556 = vmatprep.subr.msk.mxu0 %vm208_vm1, %v1898_v14 }
 0xb24   :  { %3561 = vmatprep.subr.msk.mxu1 %vm208_vm1, %v1987_v13  ;;  %3557 = vmatpush3.xpose.msk.msra.mxu0 %vm208_vm1, %v1898_v14 }
 0xb25   :  { %3562 = vmatpush3.xpose.msk.msra.mxu1 %vm208_vm1, %v1987_v13  ;;  %3565 = vmatprep.mubr.msk.f32.mxu1 %vm208_vm1, %v4251_v7 }
 0xb26   :  { %v1985_v15 = vpop.permute.xlu1 %1984 }
 0xb27   :  { %3559 = vmatmul.mubr.msk.f32.vlgmr.msra.gmra.mxu0 %vm208_vm1, %v4236_v2  ;;  %3563 = vmatprep.subr.msk.mxu1 %vm208_vm1, %v1985_v15 }
 0xb29   :  { %3564 = vmatpush3.xpose.msk.msra.mxu1 %vm208_vm1, %v1985_v15 }
 0xb2c   :  { %3566 = vmatmul.mubr.msk.f32.vlgmr.msra.gmra.mxu1 %vm208_vm1, %v4244_v4 }
 0xb7a   :  { %v3546_v16 = vpop.f32.mrf.mxu0 }
 0xb7b   :  { %v1807_v18 = vadd.f32 %v3546_v16, %v4028_v28 }
 0xb7c   :  { %v1801_v20 = vpop.f32.mrf.mxu0 }
 0xb7d   :  { %v1802_v21 = vadd.f32 %v1801_v20, %v4030_v30  ;;  %v2074_v22 = vsel %vm553_vm2, %v1807_v18, -inf }
 0xb7e   :  { %2075 = vmax.xlane.f32.xlu0 %v2074_v22 }
 0xb7f   :  { %v2071_v23 = vsel %vm553_vm2, %v1802_v21, -inf }
 0xb82   :  { %2072 = vmax.xlane.f32.xlu0 %v2071_v23 }
 0xbe3   :  { %v3553_v24 = vpop.f32.mrf.mxu1 }
 0xbe4   :  { %v1894_v25 = vadd.f32 %v3553_v24, %v4028_v28 }
 0xbe5   :  { %v1888_v26 = vpop.f32.mrf.mxu1 }
 0xbe6   :  { %v1889_v27 = vadd.f32 %v1888_v26, %v4030_v30  ;;  %v2080_v29 = vsel %vm553_vm2, %v1894_v25, -inf }
 0xbe7   :  { %v3560_v31 = vpop.f32.mrf.mxu0  ;;  %2081 = vmax.xlane.f32.xlu0 %v2080_v29 }
 0xbe8   :  { %v1981_v32 = vadd.f32 %v3560_v31, %v4028_v28  ;;  %v2077_v33 = vsel %vm553_vm2, %v1889_v27, -inf }
 0xbe9   :  { %2078 = vmax.xlane.f32.xlu1 %v2077_v33  ;;  %v1975_v34 = vpop.f32.mrf.mxu0 }
 0xbea   :  { %v1976_v35 = vadd.f32 %v1975_v34, %v4030_v30  ;;  %v2086_v36 = vsel %vm553_vm2, %v1981_v32, -inf }
 0xbeb   :  { %2087 = vmax.xlane.f32.xlu0 %v2086_v36 }
 0xbec   :  { %v3567_v37 = vpop.f32.mrf.mxu1  ;;  %v2083_v38 = vsel %vm553_vm2, %v1976_v35, -inf }
 0xbed   :  { %v2068_v39 = vadd.f32 %v3567_v37, %v4028_v28  ;;  %2084 = vmax.xlane.f32.xlu1 %v2083_v38 }
 0xbee   :  { %v2062_v40 = vpop.f32.mrf.mxu1 }
 0xbef   :  { %v2063_v41 = vadd.f32 %v2062_v40, %v4030_v30  ;;  %v2092_v42 = vsel %vm553_vm2, %v2068_v39, -inf }
 0xbf0   :  { %2093 = vmax.xlane.f32.xlu0 %v2092_v42 }
 0xbf1   :  { %v2089_v43 = vsel %vm553_vm2, %v2063_v41, -inf }
 0xbf2   :  { %2090 = vmax.xlane.f32.xlu1 %v2089_v43 }
 0xc03   :  { %2161 = vrot.lane.b32.xlu1 %v4206_v61, %s3832_s17 }
 0xc06   :  { %2248 = vrot.lane.b32.xlu0 %v4228_v0, %s3832_s17 }
 0xc07   :  { %2159 = vrot.lane.b32.xlu1 %v4208_v63, %s3832_s17  ;;  %v2076_v28 = vpop.xlane.xlu0 %2075 }
 0xc08   :  { %v2096_v30 = vsub.f32 %v1807_v18, %v2076_v28 }
 0xc0a   :  { %2335 = vrot.lane.b32.xlu0 %v4236_v2, %s3832_s17  ;;  %v2105_v45 = vmul.f32 1.442695, %v2096_v30 }
 0xc0b   :  { %2246 = vrot.lane.b32.xlu1 %v4232_v1, %s3832_s17  ;;  %v2073_v44 = vpop.xlane.xlu0 %2072 }
 0xc0c   :  { %v2095_v46 = vsub.f32 %v1802_v21, %v2073_v44  ;;  %3697 = vpow2.f32 %v2105_v45 }
 0xc0e   :  { %v2103_v47 = vmul.f32 1.442695, %v2095_v46 }
 0xc0f   :  { %2333 = vrot.lane.b32.xlu1 %v4242_v3, %s3832_s17 }
 0xc10   :  { %3699 = vpow2.f32 %v2103_v47 }
 0xc19   :  { %v4310_v19 = vpop.eup %3697 }
 0xc1a   :  { %v2122_v17 = vsel %vm553_vm2, %v4310_v19, 0.0 }
 0xc1d   :  { %v4314_v8 = vpop.eup %3699 }
 0xc1e   :  { %v2119_v6 = vsel %vm553_vm2, %v4314_v8, 0.0 }
 0xc33   :  { %2123 = vadd.xlane.f32.xlu1 %v2122_v17 }
 0xc37   :  { %2120 = vadd.xlane.f32.xlu1 %v2119_v6 }
 0xc70   :  { %v2082_v48 = vpop.xlane.xlu0 %2081 }
 0xc71   :  { %v2098_v49 = vsub.f32 %v1894_v25, %v2082_v48  ;;  %v3238_v48 = vld [vmem:[%s4446_s5 + $0x20] sm:$0xff] }
 0xc72   :  { %v2079_v50 = vpop.xlane.xlu1 %2078 }
 0xc73   :  { %v2109_v51 = vmul.f32 1.442695, %v2098_v49  ;;  %v2097_v52 = vsub.f32 %v1889_v27, %v2079_v50  ;;  %v3239_v49 = vld [vmem:[%s4446_s5 + $0x28] sm:$0xff]  ;;  %v3240_v50 = vld [vmem:[%s4446_s5 + $0x30] sm:$0xff] }
 0xc74   :  { %v2088_v53 = vpop.xlane.xlu0 %2087 }
 0xc75   :  { %3701 = vpow2.f32 %v2109_v51  ;;  %v2100_v54 = vsub.f32 %v1981_v32, %v2088_v53  ;;  %v2107_v55 = vmul.f32 1.442695, %v2097_v52  ;;  %v3241_v51 = vld [vmem:[%s4446_s5 + $0x38] sm:$0xff] }
 0xc76   :  { %v2085_v56 = vpop.xlane.xlu1 %2084 }
 0xc77   :  { %v2113_v59 = vmul.f32 1.442695, %v2100_v54  ;;  %v2099_v60 = vsub.f32 %v1976_v35, %v2085_v56 }
 0xc79   :  { %3703 = vpow2.f32 %v2113_v59  ;;  %v2111_v61 = vmul.f32 1.442695, %v2099_v60  ;;  %v2094_v62 = vpop.xlane.xlu0 %2093 }
 0xc7a   :  { %3705 = vpow2.f32 %v2107_v55  ;;  %v2102_v63 = vsub.f32 %v2068_v39, %v2094_v62 }
 0xc7b   :  { %3707 = vpow2.f32 %v2111_v61  ;;  %v2091_v0 = vpop.xlane.xlu1 %2090 }
 0xc7c   :  { %v2117_v1 = vmul.f32 1.442695, %v2102_v63  ;;  %v2101_v2 = vsub.f32 %v2063_v41, %v2091_v0 }
 0xc7d   :  { %v2249_v3 = vpop.permute.xlu0 %2248 }
 0xc7e   :  { %v2115_v5 = vmul.f32 1.442695, %v2101_v2  ;;  %3575 = vmatprep.subr.mxu1 %v2249_v3  ;;  %3709 = vpow2.f32 %v2117_v1 }
 0xc7f   :  { %v2162_v9 = vpop.permute.xlu1 %2161  ;;  %3576 = vmatpush3.msra.mxu1 %v2249_v3 }
 0xc80   :  { %3711 = vpow2.f32 %v2115_v5  ;;  %3568 = vmatprep.subr.mxu0 %v2162_v9 }
 0xc81   :  { %3569 = vmatpush3.msra.mxu0 %v2162_v9  ;;  %v2336_v13 = vpop.permute.xlu0 %2335 }
 0xc82   :  { %v4318_v10 = vpop.eup %3701 }
 0xc83   :  { %v2160_v11 = vpop.permute.xlu1 %2159  ;;  %v2128_v12 = vsel %vm553_vm2, %v4318_v10, 0.0 }
 0xc84   :  { %3570 = vmatprep.subr.mxu0 %v2160_v11  ;;  %2129 = vadd.xlane.f32.xlu0 %v2128_v12 }
 0xc85   :  { %3571 = vmatpush3.msra.mxu0 %v2160_v11  ;;  %v3251_v11 = vld [vmem:[%s4447_s6 + $0x1] ss:$0 sm:$0xff] }
 0xc86   :  { %v3704_v14 = vpop.eup %3703  ;;  %3582 = vmatprep.subr.mxu0 %v2336_v13 }
 0xc87   :  { %v3706_v15 = vpop.eup %3705  ;;  %v2247_v16 = vpop.permute.xlu1 %2246  ;;  %v2134_v18 = vsel %vm553_vm2, %v3704_v14, 0.0 }
 0xc88   :  { %v3708_v20 = vpop.eup %3707  ;;  %3577 = vmatprep.subr.mxu1 %v2247_v16  ;;  %2135 = vadd.xlane.f32.xlu0 %v2134_v18  ;;  %v2125_v22 = vsel %vm553_vm2, %v3706_v15, 0.0 }
 0xc89   :  { %3578 = vmatpush3.msra.mxu1 %v2247_v16  ;;  %v2131_v21 = vsel %vm553_vm2, %v3708_v20, 0.0 }
 0xc8a   :  { %2132 = vadd.xlane.f32.xlu1 %v2131_v21 }
 0xc8b   :  { %v3710_v23 = vpop.eup %3709  ;;  %v2334_v27 = vpop.permute.xlu1 %2333 }
 0xc8c   :  { %2126 = vadd.xlane.f32.xlu0 %v2125_v22  ;;  %v2140_v26 = vsel %vm553_vm2, %v3710_v23, 0.0 }
 0xc8d   :  { %v3712_v24 = vpop.eup %3711 }
 0xc8e   :  { %v2137_v25 = vsel %vm553_vm2, %v3712_v24, 0.0 }
 0xc8f   :  { %2138 = vadd.xlane.f32.xlu1 %v2137_v25 }
 0xc90   :  { %2141 = vadd.xlane.f32.xlu0 %v2140_v26 }
 0xca0   :  { %2420 = vrot.lane.b32.xlu1 %v4251_v7, %s3832_s17 }
 0xca6   :  { %2422 = vrot.lane.b32.xlu0 %v4244_v4, %s3832_s17 }
 0xcbc   :  { %v2124_v29 = vpop.xlane.xlu1 %2123 }
 0xcbd   :  { %3713 = vrcp.f32 %v2124_v29 }
 0xcc0   :  { %v2121_v31 = vpop.xlane.xlu1 %2120 }
 0xcc1   :  { %3715 = vrcp.f32 %v2121_v31 }
 0xcca   :  { %v3714_v32 = vpop.eup %3713 }
 0xccb   :  { %v2152_v35 = vmul.f32 %v3714_v32, %v4310_v19 }
 0xcce   :  { %v3716_v33 = vpop.eup %3715 }
 0xccf   :  { %v2151_v34 = vmul.f32 %v3716_v33, %v4314_v8 }
 0xcd1   :  { %3572 = vmatprep.mubr.msk.f32.mxu0 %vm553_vm2, %v2151_v34 }
 0xcd2   :  { %3573 = vmatmul.mubr.msk.f32.vlgmr.msra.gmra.mxu0 %vm553_vm2, %v2152_v35 }
 0xcd3   :  { %3583 = vmatpush3.msra.mxu0 %v2336_v13 }
 0xcd4   :  { %3584 = vmatprep.subr.mxu0 %v2334_v27 }
 0xcd5   :  { %3585 = vmatpush3.msra.mxu0 %v2334_v27 }
 0xcd6   :  { %3596 = vmatprep.subr.mxu0 %v3239_v49 }
 0xd0d   :  { %v2130_v7 = vpop.xlane.xlu0 %2129 }
 0xd11   :  { %v2136_v4 = vpop.xlane.xlu0 %2135 }
 0xd12   :  { %3717 = vrcp.f32 %v2136_v4  ;;  %v3257_v4 = vld [vmem:[%s4448_s7 + $0x28] sm:$0xff] }
 0xd13   :  { %v2133_v36 = vpop.xlane.xlu1 %2132 }
 0xd14   :  { %3719 = vrcp.f32 %v2133_v36  ;;  %v3256_v36 = vld [vmem:[%s4448_s7 + $0x20] sm:$0xff] }
 0xd15   :  { %3721 = vrcp.f32 %v2130_v7  ;;  %v2127_v37 = vpop.xlane.xlu0 %2126  ;;  %v3258_v7 = vld [vmem:[%s4448_s7 + $0x30] sm:$0xff] }
 0xd16   :  { %3723 = vrcp.f32 %v2127_v37  ;;  %v3271_v37 = vld [vmem:[%s4450_s9 + $0x78] sm:$0xff] }
 0xd18   :  { %v2139_v38 = vpop.xlane.xlu1 %2138 }
 0xd19   :  { %3725 = vrcp.f32 %v2139_v38  ;;  %v2142_v39 = vpop.xlane.xlu0 %2141  ;;  %v3270_v38 = vld [vmem:[%s4450_s9 + $0x70] sm:$0xff] }
 0xd1a   :  { %3727 = vrcp.f32 %v2142_v39  ;;  %v3269_v39 = vld [vmem:[%s4450_s9 + $0x68] sm:$0xff] }
 0xd1c   :  { %v2421_v8 = vpop.permute.xlu1 %2420 }
 0xd1d   :  { %v2423_v40 = vpop.permute.xlu0 %2422 }
 0xd1e   :  { %3589 = vmatprep.subr.mxu1 %v2423_v40 }
 0xd1f   :  { %v3718_v41 = vpop.eup %3717 }
 0xd20   :  { %v2156_v44 = vmul.f32 %v3718_v41, %v3704_v14 }
 0xd21   :  { %v3720_v42 = vpop.eup %3719 }
 0xd22   :  { %v3722_v43 = vpop.eup %3721  ;;  %v2155_v28 = vmul.f32 %v3720_v42, %v3708_v20 }
 0xd23   :  { %v3724_v30 = vpop.eup %3723  ;;  %v2154_v46 = vmul.f32 %v3722_v43, %v4318_v10 }
 0xd24   :  { %3586 = vmatprep.mubr.msk.f32.mxu0 %vm553_vm2, %v2155_v28  ;;  %v2153_v45 = vmul.f32 %v3724_v30, %v3706_v15 }
 0xd25   :  { %3587 = vmatmul.mubr.msk.f32.vlgmr.msra.gmra.mxu0 %vm553_vm2, %v2156_v44 }
 0xd26   :  { %v3726_v47 = vpop.eup %3725  ;;  %3579 = vmatprep.mubr.msk.f32.mxu1 %vm553_vm2, %v2153_v45  ;;  %3597 = vmatpush3.msra.mxu0 %v3239_v49 }
 0xd27   :  { %v3728_v19 = vpop.eup %3727  ;;  %3580 = vmatmul.mubr.msk.f32.vlgmr.msra.gmra.mxu1 %vm553_vm2, %v2154_v46  ;;  %v2157_v17 = vmul.f32 %v3726_v47, %v3712_v24  ;;  %3606 = vmatprep.subr.mxu0 %v3240_v50  ;;  %v3253_v46 = vld [vmem:[%s4452_s11 + $0x1] ss:$0 sm:$0xff] }
 0xd28   :  { %3590 = vmatpush3.msra.mxu1 %v2423_v40  ;;  %v2158_v6 = vmul.f32 %v3728_v19, %v3710_v23  ;;  %v3268_v40 = vld [vmem:[%s4450_s9 + $0x60] sm:$0xff] }
 0xd29   :  { %3591 = vmatprep.subr.mxu1 %v2421_v8  ;;  %3593 = vmatprep.mubr.msk.f32.mxu1 %vm553_vm2, %v2157_v17  ;;  %v3255_v19 = vld [vmem:[%s4453_s12 + $0x1] ss:$0 sm:$0xff] }
 0xd2a   :  { %3592 = vmatpush3.msra.mxu1 %v2421_v8 }
 0xd2b   :  { %3594 = vmatmul.mubr.msk.f32.vlgmr.msra.gmra.mxu1 %vm553_vm2, %v2158_v6  ;;  %3601 = vmatprep.subr.mxu1 %v3238_v48 }
 0xd2c   :  { %3602 = vmatpush3.msra.mxu1 %v3238_v48 }
 0xd2d   :  { %3611 = vmatprep.subr.mxu1 %v3241_v51 }
 0xd92   :  { %v3574_v52 = vpop.f32.mrf.mxu0 }
 0xd94   :  { %v2237_v53 = vpop.f32.mrf.mxu0 }
 0xd95   :  { %3603 = vmatprep.mubr.msk.f32.mxu1 %vm208_vm1, %v2237_v53  ;;  %v3265_v53 = vld [vmem:[%s4450_s9 + $0x48] sm:$0xff] }
 0xd96   :  { %3604 = vmatmul.mubr.msk.f32.vlgmr.msra.gmra.mxu1 %vm208_vm1, %v3574_v52  ;;  %v3266_v52 = vld [vmem:[%s4450_s9 + $0x50] sm:$0xff] }
 0xd97   :  { %3612 = vmatpush3.msra.mxu1 %v3241_v51  ;;  %v3267_v51 = vld [vmem:[%s4450_s9 + $0x58] sm:$0xff] }
 0xd98   :  { %3627 = vmatprep.subr.mxu1 %v3271_v37 }
 0xde5   :  { %v3588_v54 = vpop.f32.mrf.mxu0 }
 0xde7   :  { %v3581_v55 = vpop.f32.mrf.mxu1  ;;  %v2411_v59 = vpop.f32.mrf.mxu0 }
 0xde9   :  { %v2324_v56 = vpop.f32.mrf.mxu1 }
 0xdea   :  { %3598 = vmatprep.mubr.msk.f32.mxu0 %vm208_vm1, %v2324_v56 }
 0xdeb   :  { %v3595_v60 = vpop.f32.mrf.mxu1  ;;  %3599 = vmatmul.mubr.msk.f32.vlgmr.msra.gmra.mxu0 %vm208_vm1, %v3581_v55  ;;  %v3261_v55 = vld [vmem:[%s4449_s8 + $0x1] ss:$0 sm:$0xff] }
 0xdec   :  { %3607 = vmatpush3.msra.mxu0 %v3240_v50  ;;  %3608 = vmatprep.mubr.msk.f32.mxu0 %vm208_vm1, %v2411_v59 }
 0xded   :  { %v2498_v61 = vpop.f32.mrf.mxu1 }
 0xdee   :  { %3613 = vmatprep.mubr.msk.f32.mxu1 %vm208_vm1, %v2498_v61 }
 0xdef   :  { %3609 = vmatmul.mubr.msk.f32.vlgmr.msra.gmra.mxu0 %vm208_vm1, %v3588_v54  ;;  %3614 = vmatmul.mubr.msk.f32.vlgmr.msra.gmra.mxu1 %vm208_vm1, %v3595_v60  ;;  %v3264_v54 = vld [vmem:[%s4450_s9 + $0x40] sm:$0xff] }
 0xdf0   :  { %3628 = vmatpush3.msra.mxu1 %v3271_v37 }
 0xdf1   :  { %3629 = vmatprep.subr.mxu1 %v3270_v38 }
 0xdf2   :  { %3630 = vmatpush3.msra.mxu1 %v3270_v38 }
 0xdf3   :  { %3631 = vmatprep.subr.mxu1 %v3269_v39 }
 0xdf4   :  { %3632 = vmatpush3.msra.mxu1 %v3269_v39 }
 0xdf5   :  { %3633 = vmatprep.subr.mxu1 %v3268_v40 }
 0xdf6   :  { %3634 = vmatpush3.msra.mxu1 %v3268_v40 }
 0xdf7   :  { %3635 = vmatprep.subr.mxu1 %v3267_v51 }
 0xdf8   :  { %3636 = vmatpush3.msra.mxu1 %v3267_v51 }
 0xdf9   :  { %3637 = vmatprep.subr.mxu1 %v3266_v52 }
 0xdfa   :  { %3638 = vmatpush3.msra.mxu1 %v3266_v52 }
 0xdfb   :  { %3639 = vmatprep.subr.mxu1 %v3265_v53 }
 0xdfc   :  { %3640 = vmatpush3.msra.mxu1 %v3265_v53 }
 0xdfd   :  { %3641 = vmatprep.subr.mxu1 %v3264_v54 }
 0xdfe   :  { %3642 = vmatpush3.msra.mxu1 %v3264_v54 }
 0xe56   :  { %v3605_v62 = vpop.f32.mrf.mxu1 }
 0xe58   :  { %v2665_v0 = vpop.f32.mrf.mxu1 }
 0xeab   :  { %v3600_v63 = vpop.f32.mrf.mxu0 }
 0xeac   :  { %v2671_v2 = vadd.f32 %v3605_v62, %v3600_v63 }
 0xead   :  { %v2584_v1 = vpop.f32.mrf.mxu0 }
 0xeae   :  { %v2666_v9 = vadd.f32 %v2665_v0, %v2584_v1  ;;  %v3273_v0 = vld [vmem:[%s4451_s10 + $0x1] ss:$0 sm:$0xff] }
 0xeaf   :  { %v3610_v3 = vpop.f32.mrf.mxu0  ;;  %v3615_v5 = vpop.f32.mrf.mxu1 }
 0xeb0   :  { %v2756_v10 = vadd.f32 %v3610_v3, %v2671_v2 }
 0xeb1   :  { %v2746_v12 = vpop.f32.mrf.mxu0  ;;  %v2829_v15 = vpop.f32.mrf.mxu1 }
 0xeb2   :  { %v2839_v13 = vadd.f32 %v3615_v5, %v2756_v10  ;;  %v2755_v14 = vadd.f32 %v2746_v12, %v2666_v9 }
 0xeb4   :  { %v2849_v16 = vadd.f32 %v3251_v11, %v2839_v13  ;;  %v2838_v18 = vadd.f32 %v2829_v15, %v2755_v14 }
 0xeb6   :  { %v2848_v20 = vadd.f32 %v3251_v11, %v2838_v18  ;;  %v2851_v21 = vadd.f32 %v2849_v16, %v4197_v58 }
 0xeb8   :  { %v2855_v22 = vsel %vm108_vm0, %v2851_v21, 0.0  ;;  %v2850_v23 = vadd.f32 %v2848_v20, %v4195_v57  ;;  %v3259_v57 = vld [vmem:[%s4448_s7 + $0x38] sm:$0xff] }
 0xeb9   :  { %2856 = vadd.xlane.f32.xlu1 %v2855_v22  ;;  %3616 = vmatprep.subr.mxu0 %v3259_v57 }
 0xeba   :  { %v2852_v24 = vsel %vm108_vm0, %v2850_v23, 0.0  ;;  %3617 = vmatpush3.msra.mxu0 %v3259_v57  ;;  %v3279_v57 = vld [vmem:[%s4455_s14 + $0x1] ss:$0 sm:$0xff] }
 0xebb   :  { %2853 = vadd.xlane.f32.xlu0 %v2852_v24  ;;  %3618 = vmatprep.subr.mxu0 %v3258_v7 }
 0xebc   :  { %3619 = vmatpush3.msra.mxu0 %v3258_v7 }
 0xebd   :  { %3620 = vmatprep.subr.mxu0 %v3257_v4 }
 0xebe   :  { %3621 = vmatpush3.msra.mxu0 %v3257_v4 }
 0xebf   :  { %3622 = vmatprep.subr.mxu0 %v3256_v36 }
 0xec0   :  { %3623 = vmatpush3.msra.mxu0 %v3256_v36 }
 0xf42   :  { %v2857_v25 = vpop.xlane.xlu1 %2856 }
 0xf43   :  { %v2859_v26 = vmul.f32 0.03125, %v2857_v25 }
 0xf44   :  { %v2854_v27 = vpop.xlane.xlu0 %2853 }
 0xf45   :  { %v2858_v29 = vmul.f32 0.03125, %v2854_v27  ;;  %v2861_v31 = vsub.f32 %v2851_v21, %v2859_v26 }
 0xf47   :  { %v2860_v32 = vsub.f32 %v2850_v23, %v2858_v29  ;;  %v2863_v35 = vmul.f32 %v2861_v31, %v2861_v31 }
 0xf49   :  { %v2862_v33 = vmul.f32 %v2860_v32, %v2860_v32  ;;  %v2867_v58 = vsel %vm108_vm0, %v2863_v35, 0.0 }
 0xf4b   :  { %v2864_v34 = vsel %vm108_vm0, %v2862_v33, 0.0 }
 0xf4c   :  { %2865 = vadd.xlane.f32.xlu0 %v2864_v34  ;;  %v3277_v34 = vld [vmem:[%s4454_s13 + $0x1] ss:$0 sm:$0xff] }
 0xf50   :  { %2868 = vadd.xlane.f32.xlu0 %v2867_v58 }
 0xfd5   :  { %v2866_v41 = vpop.xlane.xlu0 %2865 }
 0xfd6   :  { %v2870_v42 = vmul.f32 0.03125, %v2866_v41 }
 0xfd8   :  { %v2872_v43 = vadd.f32 1e-05, %v2870_v42 }
 0xfd9   :  { %v2869_v28 = vpop.xlane.xlu0 %2868 }
 0xfda   :  { %3729 = vrsqrt.f32 %v2872_v43  ;;  %v2871_v30 = vmul.f32 0.03125, %v2869_v28 }
 0xfdc   :  { %v2873_v44 = vadd.f32 1e-05, %v2871_v30 }
 0xfde   :  { %3731 = vrsqrt.f32 %v2873_v44 }
 0xfe7   :  { %v3730_v45 = vpop.eup %3729 }
 0xfe8   :  { %v2876_v47 = vmul.f32 %v3730_v45, %v2860_v32 }
 0xfea   :  { %v2886_v17 = vmul.f32 %v3253_v46, %v2876_v47 }
 0xfeb   :  { %v3732_v8 = vpop.eup %3731 }
 0xfec   :  { %v2877_v6 = vmul.f32 %v3732_v8, %v2861_v31  ;;  %v2896_v48 = vadd.f32 %v3255_v19, %v2886_v17 }
 0xfee   :  { %v2887_v49 = vmul.f32 %v3253_v46, %v2877_v6  ;;  %3624 = vmatprep.mubr.msk.f32.mxu0 %vm108_vm0, %v2896_v48 }
 0xff0   :  { %v2897_v50 = vadd.f32 %v3255_v19, %v2887_v49 }
 0xff2   :  { %3625 = vmatmul.mubr.msk.f32.vlgmr.msra.gmra.mxu0 %vm108_vm0, %v2897_v50 }
0x10b2   :  { %v3626_v56 = vpop.f32.mrf.mxu0 }
0x10b3   :  { %v2989_v59 = vadd.f32 %v3626_v56, %v3261_v55 }
0x10b4   :  { %v2983_v60 = vpop.f32.mrf.mxu0 }
0x10b5   :  { %v2984_v61 = vadd.f32 %v3261_v55, %v2983_v60  ;;  %v2993_v63 = vmax.f32 %v2989_v59, 0.0 }
0x10b7   :  { %v2992_v62 = vmax.f32 %v2984_v61, 0.0 }
0x10b9   :  { %3643 = vmatprep.mubr.msk.f32.mxu1 %vm1487_vm3, %v2992_v62 }
0x10ba   :  { %3644 = vmatmul.mubr.msk.f32.vlgmr.msra.gmra.mxu1 %vm1487_vm3, %v2993_v63 }
0x117a   :  { %v3645_v1 = vpop.f32.mrf.mxu1 }
0x117b   :  { %v3089_v2 = vadd.f32 %v3645_v1, %v3273_v0 }
0x117c   :  { %v3083_v3 = vpop.f32.mrf.mxu1 }
0x117d   :  { %v3084_v5 = vadd.f32 %v3273_v0, %v3083_v3  ;;  %v3093_v9 = vadd.f32 %v3089_v2, %v2897_v50 }
0x117f   :  { %v3097_v10 = vsel %vm108_vm0, %v3093_v9, 0.0  ;;  %v3092_v11 = vadd.f32 %v3084_v5, %v2896_v48 }
0x1180   :  { %3098 = vadd.xlane.f32.xlu0 %v3097_v10 }
0x1181   :  { %v3094_v12 = vsel %vm108_vm0, %v3092_v11, 0.0 }
0x1182   :  { %3095 = vadd.xlane.f32.xlu1 %v3094_v12 }
0x1209   :  { %v3099_v13 = vpop.xlane.xlu0 %3098 }
0x120a   :  { %v3101_v14 = vmul.f32 0.03125, %v3099_v13 }
0x120b   :  { %v3096_v15 = vpop.xlane.xlu1 %3095 }
0x120c   :  { %v3103_v16 = vsub.f32 %v3093_v9, %v3101_v14  ;;  %v3100_v18 = vmul.f32 0.03125, %v3096_v15 }
0x120e   :  { %v3102_v20 = vsub.f32 %v3092_v11, %v3100_v18  ;;  %v3105_v21 = vmul.f32 %v3103_v16, %v3103_v16 }
0x1210   :  { %v3109_v22 = vsel %vm108_vm0, %v3105_v21, 0.0  ;;  %v3104_v23 = vmul.f32 %v3102_v20, %v3102_v20 }
0x1211   :  { %3110 = vadd.xlane.f32.xlu0 %v3109_v22 }
0x1212   :  { %v3106_v24 = vsel %vm108_vm0, %v3104_v23, 0.0 }
0x1213   :  { %3107 = vadd.xlane.f32.xlu1 %v3106_v24 }
0x129a   :  { %v3111_v25 = vpop.xlane.xlu0 %3110 }
0x129b   :  { %v3113_v26 = vmul.f32 0.03125, %v3111_v25 }
0x129c   :  { %v3108_v27 = vpop.xlane.xlu1 %3107 }
0x129d   :  { %v3115_v29 = vadd.f32 1e-05, %v3113_v26  ;;  %v3112_v31 = vmul.f32 0.03125, %v3108_v27 }
0x129f   :  { %3733 = vrsqrt.f32 %v3115_v29  ;;  %v3114_v32 = vadd.f32 1e-05, %v3112_v31 }
0x12a1   :  { %3735 = vrsqrt.f32 %v3114_v32 }
0x12ac   :  { %v3734_v33 = vpop.eup %3733 }
0x12ad   :  { %v3119_v35 = vmul.f32 %v3734_v33, %v3103_v16 }
0x12ae   :  { %v3736_v58 = vpop.eup %3735 }
0x12af   :  { %v3118_v7 = vmul.f32 %v3736_v58, %v3102_v20  ;;  %v3129_v4 = vmul.f32 %v3277_v34, %v3119_v35 }
0x12b1   :  { %v3128_v36 = vmul.f32 %v3277_v34, %v3118_v7  ;;  %v3139_v37 = vadd.f32 %v3279_v57, %v3129_v4 }
0x12b3   :  { %v3138_v38 = vadd.f32 %v3279_v57, %v3128_v36  ;;  %3141 = vst.msk [vmem:[#allocation8 + $0x8] sm:$0xff] %vm108_vm0, %v3139_v37 }
0x12b5   :  { %3140 = vst.msk [vmem:[#allocation8] sm:$0xff] %vm108_vm0, %v3138_v38 }
0x12b6   :  { %3808 = shalt.err (!%p3805_p5)
}
0x12b7   :  { %3153 = dma.vmem_to_hbm [thread:$0]  %s3148_s29, 256, %s4456_s15, [#allocation4], %s3825_s26, %s3825_s26, %s3826_s27  }
0x12b8   :  { %3821 = dma.done.wait [#allocation4], 256  }
0x12b9   :  { %3822 = vsyncadd [#allocation4], 4294967040 }
0x12ba   :  { %3157 = vsyncpa [#allocation3], 1 }
0x12bb   :  { %3158 = vsyncpa [#allocation6], 1 }
0x12bc   :  { %3159 = vsyncpa [#allocation4], 1 }

</bundles_post_ra>
